<compile_context>
chip_gen: v6e
topology: v6e:2x2x1
jax: 0.10.0
libtpu: 0.0.40
codegen_flags: <defaults>
</compile_context>

<pallas_src>
import math

import numpy as np
import jax
import jax.numpy as jnp
from jax.experimental import pallas as pl
from jax.experimental.pallas import tpu as pltpu


_VMEM_LIMIT = 64 * 1024 * 1024     # safe on v5e/v6e (128 MiB phys) and v7x (64 MiB phys)


# ------------------------------------------------------------------ #
# Tiling helpers
# ------------------------------------------------------------------ #
def _row_tile(M, target=512):
    """Largest divisor of M that is <= target and a multiple of 8 (or M itself),
    preferring a tile that leaves at least 2 grid steps (pipelining / 2 TCs on v7x).
    NOTE: at real Swin dims (C=768, Hd=3072) pass target=256 for v7x's 64 MiB VMEM."""
    cap = min(target, M // 2) if M // 2 >= 8 else min(target, M)
    for cand in range(max(cap, 1), 0, -1):
        if M % cand == 0 and (cand % 8 == 0 or cand == M):
            return cand
    return M


def _choose_w_blk(nW_bias, Bw, N, target_rows=512):
    """Windows per grid step.  Must divide Bw; must be a multiple OR divisor of the
    bias leading-window count so the bias can be indexed in-kernel; W_BLK*N (the
    second-to-last block dim) must satisfy the (8,128) rule; prefer >=2 grid steps."""
    target = max(1, target_rows // N)
    cands = []
    k = 1
    while k * nW_bias <= Bw:
        if Bw % (k * nW_bias) == 0:
            cands.append(k * nW_bias)
        k += 1
    for d in range(1, nW_bias):
        if nW_bias % d == 0:
            cands.append(d)
    cands = sorted(set(c for c in cands if ((c * N) % 8 == 0 or c == Bw)))
    if not cands:
        return Bw
    multi = [c for c in cands if Bw // c >= 2]          # keep >=2 grid steps if possible
    pool = multi if multi else cands
    under = [c for c in pool if c <= target]
    return max(under) if under else min(pool)


# ------------------------------------------------------------------ #
# Kernel 1: LayerNorm1 + window attention (fused QKV / proj) + residual
# ------------------------------------------------------------------ #
def _fused_attn_kernel(x_ref, g_ref, b_ref, wqkv_ref, bqkv_ref, wproj_ref, bproj_ref,
                       bias_ref, o_ref):
    # x_ref:     (W_BLK*N, C)  raw (pre-LN) tokens of W_BLK windows, f32
    # wqkv_ref:  (C, 3C)  bf16   (softmax scale pre-folded into the Q columns)
    # bqkv_ref:  (1, 3C)  f32    (Q part pre-scaled)
    # wproj_ref: (heads, hd, C) bf16  head-major -> wproj_ref[h] is a free view
    # bproj_ref: (1, C)   f32
    # bias_ref:  (heads, nW_b, N, N) f32  head-major rel-pos bias (+ shift mask)
    rows, C = x_ref.shape
    num_heads, nW, n, _ = bias_ref.shape
    w_blk = rows // n
    hd = C // num_heads

    x = x_ref[...]                                               # (rows, C) f32

    # ---- LayerNorm1 (f32 statistics, PyTorch eps) ----
    mean = jnp.mean(x, axis=-1, keepdims=True)
    var = jnp.mean((x - mean) ** 2, axis=-1, keepdims=True)
    xn = (x - mean) * jax.lax.rsqrt(var + 1e-5) * g_ref[...] + b_ref[...]

    # ---- fused QKV projection: one (rows, C) x (C, 3C) MXU matmul ----
    qkv = jnp.dot(xn.astype(jnp.bfloat16), wqkv_ref[...],
                  preferred_element_type=jnp.float32) + bqkv_ref[...]   # (rows, 3C)

    full_batches = (w_blk % nW == 0)
    if full_batches:
        reps = w_blk // nW
    else:
        # block is a sub-range of one image's windows; _choose_w_blk guarantees w_blk | nW
        off = (pl.program_id(0) % (nW // w_blk)) * w_blk

    # Residual + projection bias seed the accumulator; the per-head projections are
    # accumulated into it in f32 (no lane-axis concat of hd-wide head outputs).
    acc = x + bproj_ref[...]

    # NOTE: a head-batched dot_general ((w_blk*heads) leading batch dim) would replace
    # this unrolled loop, but it needs in-kernel (w,n,h,d)->(w,h,n,d) relayouts whose
    # Mosaic lowering is not guaranteed across generations; the loop form is kept for
    # robustness, with all per-head weight/bias slices made free leading-axis views.
    for h in range(num_heads):
        q = qkv[:, h * hd:(h + 1) * hd].reshape(w_blk, n, hd).astype(jnp.bfloat16)
        k = qkv[:, C + h * hd: C + (h + 1) * hd].reshape(w_blk, n, hd).astype(jnp.bfloat16)
        v = qkv[:, 2 * C + h * hd: 2 * C + (h + 1) * hd].reshape(w_blk, n, hd).astype(jnp.bfloat16)

        s = jax.lax.dot_general(q, k, (((2,), (2,)), ((0,), (0,))),
                                preferred_element_type=jnp.float32)      # (w_blk, n, n)
        if full_batches:
            s = (s.reshape(reps, nW, n, n) + bias_ref[h][None]).reshape(w_blk, n, n)
        else:
            s = s + bias_ref[h, pl.ds(off, w_blk)]

        # exact softmax (f32); pl.reciprocal(approx=False) keeps parity with PyTorch
        s = s - jnp.max(s, axis=-1, keepdims=True)
        p = jnp.exp(s)
        p = p * pl.reciprocal(jnp.sum(p, axis=-1, keepdims=True), approx=False)

        o_h = jax.lax.dot_general(p.astype(jnp.bfloat16), v,
                                  (((2,), (1,)), ((0,), (0,))),
                                  preferred_element_type=jnp.float32)    # (w_blk, n, hd)
        acc = acc + jnp.dot(o_h.reshape(rows, hd).astype(jnp.bfloat16), wproj_ref[h],
                            preferred_element_type=jnp.float32)

    o_ref[...] = acc.astype(o_ref.dtype)


def fused_window_attention(x_flat, gamma, beta, wqkv, bqkv, wproj_hm, bproj, bias, w_blk, n):
    rows_total, C = x_flat.shape
    heads, nW = bias.shape[0], bias.shape[1]
    hd = C // heads
    assert w_blk % nW == 0 or nW % w_blk == 0, (w_blk, nW)
    blk_rows = w_blk * n
    grid = (rows_total // blk_rows,)
    return pl.pallas_call(
        _fused_attn_kernel,
        out_shape=jax.ShapeDtypeStruct((rows_total, C), x_flat.dtype),
        grid=grid,
        in_specs=[
            pl.BlockSpec((blk_rows, C), lambda i: (i, 0)),
            # constant-index_map operands below stay VMEM-resident (never re-fetched)
            pl.BlockSpec((1, C), lambda i: (0, 0)),
            pl.BlockSpec((1, C), lambda i: (0, 0)),
            pl.BlockSpec((C, 3 * C), lambda i: (0, 0)),
            pl.BlockSpec((1, 3 * C), lambda i: (0, 0)),
            pl.BlockSpec((heads, hd, C), lambda i: (0, 0, 0)),
            pl.BlockSpec((1, C), lambda i: (0, 0)),
            pl.BlockSpec(bias.shape, lambda i: (0, 0, 0, 0)),
        ],
        out_specs=pl.BlockSpec((blk_rows, C), lambda i: (i, 0)),
        compiler_params=pltpu.CompilerParams(
            dimension_semantics=("parallel",),
            vmem_limit_bytes=_VMEM_LIMIT),
    )(x_flat, gamma.reshape(1, C), beta.reshape(1, C), wqkv, bqkv, wproj_hm, bproj, bias)


# ------------------------------------------------------------------ #
# Kernel 2: LayerNorm2 + MLP (fc1 -> erf GELU -> fc2) + residual, row-tiled
# ------------------------------------------------------------------ #
def _ln_mlp_res_kernel(x_ref, g_ref, b_ref, w1_ref, b1_ref, w2_ref, b2_ref, o_ref):
    x = x_ref[...]                                               # (TM, C) f32
    mean = jnp.mean(x, axis=-1, keepdims=True)
    var = jnp.mean((x - mean) ** 2, axis=-1, keepdims=True)
    xn = (x - mean) * jax.lax.rsqrt(var + 1e-5) * g_ref[...] + b_ref[...]

    h = jnp.dot(xn.astype(jnp.bfloat16), w1_ref[...],
                preferred_element_type=jnp.float32) + b1_ref[...]
    # exact GELU (PyTorch nn.GELU default, erf-based), f32
    h = 0.5 * h * (1.0 + jax.lax.erf(h * (1.0 / math.sqrt(2.0))))
    out = jnp.dot(h.astype(jnp.bfloat16), w2_ref[...],
                  preferred_element_type=jnp.float32) + b2_ref[...]
    o_ref[...] = (x + out).astype(o_ref.dtype)


def ln_mlp_residual(x2d, gamma, beta, w1, b1, w2, b2):
    M, C = x2d.shape
    Hd = w1.shape[1]
    tm = _row_tile(M)          # use _row_tile(M, 256) at real dims on v7x (64 MiB VMEM)
    return pl.pallas_call(
        _ln_mlp_res_kernel,
        out_shape=jax.ShapeDtypeStruct((M, C), x2d.dtype),
        grid=(M // tm,),
        in_specs=[
            pl.BlockSpec((tm, C), lambda i: (i, 0)),
            pl.BlockSpec((1, C), lambda i: (0, 0)),
            pl.BlockSpec((1, C), lambda i: (0, 0)),
            pl.BlockSpec((C, Hd), lambda i: (0, 0)),
            pl.BlockSpec((1, Hd), lambda i: (0, 0)),
            pl.BlockSpec((Hd, C), lambda i: (0, 0)),
            pl.BlockSpec((1, C), lambda i: (0, 0)),
        ],
        out_specs=pl.BlockSpec((tm, C), lambda i: (i, 0)),
        compiler_params=pltpu.CompilerParams(
            dimension_semantics=("parallel",),
            vmem_limit_bytes=_VMEM_LIMIT),
    )(x2d, gamma.reshape(1, C), beta.reshape(1, C), w1, b1, w2, b2)


# ------------------------------------------------------------------ #
# JAX / numpy glue (matches the PyTorch helpers)
# ------------------------------------------------------------------ #
def window_partition(x, ws):
    B, H, W, C = x.shape
    x = x.reshape(B, H // ws, ws, W // ws, ws, C)
    return x.transpose(0, 1, 3, 2, 4, 5).reshape(-1, ws, ws, C)


def window_reverse(windows, ws, H, W):
    B = windows.shape[0] // (H * W // ws // ws)
    x = windows.reshape(B, H // ws, W // ws, ws, ws, -1)
    return x.transpose(0, 1, 3, 2, 4, 5).reshape(B, H, W, -1)


def relative_position_index_np(ws):
    coords = np.stack(np.meshgrid(np.arange(ws), np.arange(ws), indexing="ij"))
    coords_flatten = coords.reshape(2, -1)
    rel = coords_flatten[:, :, None] - coords_flatten[:, None, :]
    rel = rel.transpose(1, 2, 0).copy()
    rel[:, :, 0] += ws - 1
    rel[:, :, 1] += ws - 1
    rel[:, :, 0] *= 2 * ws - 1
    return rel.sum(-1)                                           # (N, N)


def compute_attn_mask_np(H, W, ws, shift):
    if shift == 0:
        return None
    img_mask = np.zeros((H, W), np.float32)
    h_slices = (slice(0, -ws), slice(-ws, -shift), slice(-shift, None))
    w_slices = (slice(0, -ws), slice(-ws, -shift), slice(-shift, None))
    cnt = 0
    for hs in h_slices:
        for wsl in w_slices:
            img_mask[hs, wsl] = cnt
            cnt += 1
    mw = img_mask.reshape(H // ws, ws, W // ws, ws).transpose(0, 2, 1, 3).reshape(-1, ws * ws)
    attn_mask = mw[:, None, :] - mw[:, :, None]                  # (nW, N, N)
    return np.where(attn_mask != 0, -100.0, 0.0).astype(np.float32)


# ------------------------------------------------------------------ #
# Parameter construction (deterministic, synthetic)
# ------------------------------------------------------------------ #
def build_block(key, dim, input_resolution, num_heads, window_size, shift_size, mlp_ratio):
    H, W = input_resolution
    if min(H, W) <= window_size:
        shift_size = 0
        window_size = min(H, W)
    ws = window_size
    N = ws * ws
    hd = dim // num_heads
    hidden = int(dim * mlp_ratio)
    ks = jax.random.split(key, 9)
    std = 0.02

    wqkv = std * jax.random.normal(ks[0], (dim, 3 * dim), jnp.float32)
    bqkv = 0.01 * jax.random.normal(ks[1], (3 * dim,), jnp.float32)
    wproj = std * jax.random.normal(ks[2], (dim, dim), jnp.float32)
    bproj = 0.01 * jax.random.normal(ks[3], (dim,), jnp.float32)
    table = std * jax.random.normal(ks[4], ((2 * ws - 1) ** 2, num_heads), jnp.float32)
    w1 = std * jax.random.normal(ks[5], (dim, hidden), jnp.float32)
    b1 = 0.01 * jax.random.normal(ks[6], (hidden,), jnp.float32)
    w2 = std * jax.random.normal(ks[7], (hidden, dim), jnp.float32)
    b2 = 0.01 * jax.random.normal(ks[8], (dim,), jnp.float32)

    # fold the softmax scale (hd**-0.5) into the Q columns of the fused QKV weight/bias
    scale = hd ** (-0.5)
    wqkv = wqkv.at[:, :dim].multiply(scale)
    bqkv = bqkv.at[:dim].multiply(scale)

    # relative position bias, head-major: (heads, N, N)
    rpi = relative_position_index_np(ws)
    rel_bias = table[rpi.reshape(-1)].reshape(N, N, num_heads).transpose(2, 0, 1)

    mask = compute_attn_mask_np(H, W, ws, shift_size)
    if mask is None:
        bias = rel_bias[:, None]                                  # (heads, 1, N, N)
    else:
        bias = rel_bias[:, None, :, :] + jnp.asarray(mask)[None]  # (heads, nW, N, N)

    return dict(
        ws=ws, shift=shift_size, num_heads=num_heads,
        g1=jnp.ones((dim,), jnp.float32), bb1=jnp.zeros((dim,), jnp.float32),
        g2=jnp.ones((dim,), jnp.float32), bb2=jnp.zeros((dim,), jnp.float32),
        wqkv=wqkv.astype(jnp.bfloat16), bqkv=bqkv.reshape(1, 3 * dim),
        # proj weight stored head-major (heads, hd, C) so wproj_ref[h] is a free view
        wproj=wproj.reshape(num_heads, hd, dim).astype(jnp.bfloat16),
        bproj=bproj.reshape(1, dim),
        w1=w1.astype(jnp.bfloat16), b1=b1.reshape(1, hidden),
        w2=w2.astype(jnp.bfloat16), b2=b2.reshape(1, dim),
        bias=jnp.asarray(bias, jnp.float32),
    )


# ------------------------------------------------------------------ #
# Forward pass (SwinTransformerBlock / BasicLayer semantics)
# ------------------------------------------------------------------ #
def swin_block_forward(x, p, H, W):
    B, L, C = x.shape
    ws, shift = p["ws"], p["shift"]
    N = ws * ws

    # roll + window-partition are element permutations; LN commutes with them and the
    # residual permutes identically, so LN1 + attention + residual run fused in-kernel.
    # TODO(synk): fold window_partition / window_reverse / roll into the attention
    # kernel's BlockSpec index_maps (scalar-prefetched window origins) to avoid the
    # extra XLA permutation passes over x; left in plain JAX here.
    xs = x.reshape(B, H, W, C)
    if shift > 0:
        xs = jnp.roll(xs, shift=(-shift, -shift), axis=(1, 2))
    x_windows = window_partition(xs, ws).reshape(-1, C)          # (Bw*N, C)
    Bw = (B * H * W) // N
    w_blk = _choose_w_blk(p["bias"].shape[1], Bw, N)

    out = fused_window_attention(
        x_windows, p["g1"], p["bb1"], p["wqkv"], p["bqkv"],
        p["wproj"], p["bproj"], p["bias"], w_blk, N)             # shortcut + attn

    out = window_reverse(out.reshape(-1, ws, ws, C), ws, H, W)
    if shift > 0:
        out = jnp.roll(out, shift=(shift, shift), axis=(1, 2))
    x = out.reshape(B, L, C)

    # LN2 + MLP + residual, fused, row-tiled
    x = ln_mlp_residual(x.reshape(-1, C), p["g2"], p["bb2"],
                        p["w1"], p["b1"], p["w2"], p["b2"]).reshape(B, L, C)
    return x


def basic_layer_forward(x, blocks, input_resolution):
    # BasicLayer.forward with downsample=None, upsample=None (dropout p=0.0 -> identity)
    H, W = input_resolution
    for blk in blocks:
        x = swin_block_forward(x, blk, H, W)
    return x


# ------------------------------------------------------------------ #
if __name__ == "__main__":
    dim = 32
    input_resolution = (8, 8)
    depth = 2
    num_heads = 4
    window_size = 4
    mlp_ratio = 4.0
    B = 2
    H, W = input_resolution
    L = H * W

    key = jax.random.PRNGKey(0)
    key_x, *key_blocks = jax.random.split(key, depth + 1)

    blocks = [
        build_block(key_blocks[i], dim, input_resolution, num_heads,
                    window_size, 0 if i % 2 == 0 else window_size // 2, mlp_ratio)
        for i in range(depth)
    ]

    x = jax.random.normal(key_x, (B, L, dim), jnp.float32)

    out = basic_layer_forward(x, blocks, input_resolution)
    out = jax.block_until_ready(out)
    assert out.shape == (B, L, dim)
    assert bool(jnp.all(jnp.isfinite(out)))
    print("KERNEL_OK")
</pallas_src>

<mosaic_0001>
module attributes {stable_mosaic.version = 11 : i64} {
  func.func @_fused_attn_kernel(%arg0: i32, %arg1: memref<64x32xf32, #tpu.memory_space<vmem>>, %arg2: memref<1x32xf32, #tpu.memory_space<vmem>>, %arg3: memref<1x32xf32, #tpu.memory_space<vmem>>, %arg4: memref<32x96xbf16, #tpu.memory_space<vmem>>, %arg5: memref<1x96xf32, #tpu.memory_space<vmem>>, %arg6: memref<4x8x32xbf16, #tpu.memory_space<vmem>>, %arg7: memref<1x32xf32, #tpu.memory_space<vmem>>, %arg8: memref<4x1x16x16xf32, #tpu.memory_space<vmem>>, %arg9: memref<64x32xf32, #tpu.memory_space<vmem>>) attributes {dimension_semantics = [#tpu.dimension_semantics<parallel>], iteration_bounds = array<i64: 2>, scalar_prefetch = 0 : i64, scratch_operands = 0 : i64, tpu.core_type = #tpu.core_type<tc>, window_params = [{transform_indices = @transform_0, window_bounds = array<i64: 64, 32>}, {pipeline_mode = #tpu.pipeline_mode<synchronous>, transform_indices = @transform_1, window_bounds = array<i64: 1, 32>}, {pipeline_mode = #tpu.pipeline_mode<synchronous>, transform_indices = @transform_2, window_bounds = array<i64: 1, 32>}, {pipeline_mode = #tpu.pipeline_mode<synchronous>, transform_indices = @transform_3, window_bounds = array<i64: 32, 96>}, {pipeline_mode = #tpu.pipeline_mode<synchronous>, transform_indices = @transform_4, window_bounds = array<i64: 1, 96>}, {pipeline_mode = #tpu.pipeline_mode<synchronous>, transform_indices = @transform_5, window_bounds = array<i64: 4, 8, 32>}, {pipeline_mode = #tpu.pipeline_mode<synchronous>, transform_indices = @transform_6, window_bounds = array<i64: 1, 32>}, {pipeline_mode = #tpu.pipeline_mode<synchronous>, transform_indices = @transform_7, window_bounds = array<i64: 4, 1, 16, 16>}, {transform_indices = @transform_8, window_bounds = array<i64: 64, 32>}]} {
    %c0 = arith.constant 0 : index
    %c0_0 = arith.constant 0 : index
    %0 = vector.load %arg1[%c0, %c0_0] : memref<64x32xf32, #tpu.memory_space<vmem>>, vector<64x32xf32>
    %cst = arith.constant dense<0.000000e+00> : vector<64xf32>
    %1 = vector.multi_reduction <add>, %0, %cst [1] : vector<64x32xf32> to vector<64xf32>
    %2 = vector.shape_cast %1 : vector<64xf32> to vector<64x1xf32>
    %cst_1 = arith.constant 3.200000e+01 : f32
    %3 = vector.broadcast %cst_1 : f32 to vector<64x1xf32>
    %4 = arith.divf %2, %3 : vector<64x1xf32>
    %5 = vector.broadcast %4 : vector<64x1xf32> to vector<64x32xf32>
    %6 = arith.subf %0, %5 : vector<64x32xf32>
    %7 = arith.mulf %6, %6 : vector<64x32xf32>
    %cst_2 = arith.constant dense<0.000000e+00> : vector<64xf32>
    %8 = vector.multi_reduction <add>, %7, %cst_2 [1] : vector<64x32xf32> to vector<64xf32>
    %9 = vector.shape_cast %8 : vector<64xf32> to vector<64x1xf32>
    %cst_3 = arith.constant 3.200000e+01 : f32
    %10 = vector.broadcast %cst_3 : f32 to vector<64x1xf32>
    %11 = arith.divf %9, %10 : vector<64x1xf32>
    %12 = vector.broadcast %4 : vector<64x1xf32> to vector<64x32xf32>
    %13 = arith.subf %0, %12 : vector<64x32xf32>
    %cst_4 = arith.constant 9.99999974E-6 : f32
    %14 = vector.broadcast %cst_4 : f32 to vector<64x1xf32>
    %15 = arith.addf %11, %14 : vector<64x1xf32>
    %16 = math.rsqrt %15 : vector<64x1xf32>
    %17 = vector.broadcast %16 : vector<64x1xf32> to vector<64x32xf32>
    %18 = arith.mulf %13, %17 : vector<64x32xf32>
    %c0_5 = arith.constant 0 : index
    %c0_6 = arith.constant 0 : index
    %19 = vector.load %arg2[%c0_5, %c0_6] : memref<1x32xf32, #tpu.memory_space<vmem>>, vector<1x32xf32>
    %20 = vector.broadcast %19 : vector<1x32xf32> to vector<64x32xf32>
    %21 = arith.mulf %18, %20 : vector<64x32xf32>
    %c0_7 = arith.constant 0 : index
    %c0_8 = arith.constant 0 : index
    %22 = vector.load %arg3[%c0_7, %c0_8] : memref<1x32xf32, #tpu.memory_space<vmem>>, vector<1x32xf32>
    %23 = vector.broadcast %22 : vector<1x32xf32> to vector<64x32xf32>
    %24 = arith.addf %21, %23 : vector<64x32xf32>
    %25 = arith.truncf %24 : vector<64x32xf32> to vector<64x32xbf16>
    %c0_9 = arith.constant 0 : index
    %c0_10 = arith.constant 0 : index
    %26 = vector.load %arg4[%c0_9, %c0_10] : memref<32x96xbf16, #tpu.memory_space<vmem>>, vector<32x96xbf16>
    %cst_11 = arith.constant dense<0.000000e+00> : vector<64x96xf32>
    %27 = tpu.matmul %25, %26, %cst_11 {dimension_numbers = #tpu.dot_dimension_numbers<[1], [0], [0], [1], [0, 0, 1, 1], [], []>} : vector<64x32xbf16>, vector<32x96xbf16>, vector<64x96xf32> -> vector<64x96xf32>
    %c0_12 = arith.constant 0 : index
    %c0_13 = arith.constant 0 : index
    %28 = vector.load %arg5[%c0_12, %c0_13] : memref<1x96xf32, #tpu.memory_space<vmem>>, vector<1x96xf32>
    %29 = vector.broadcast %28 : vector<1x96xf32> to vector<64x96xf32>
    %30 = arith.addf %27, %29 : vector<64x96xf32>
    %c0_14 = arith.constant 0 : index
    %c0_15 = arith.constant 0 : index
    %31 = vector.load %arg7[%c0_14, %c0_15] : memref<1x32xf32, #tpu.memory_space<vmem>>, vector<1x32xf32>
    %32 = vector.broadcast %31 : vector<1x32xf32> to vector<64x32xf32>
    %33 = arith.addf %0, %32 : vector<64x32xf32>
    %34 = vector.extract_strided_slice %30 {offsets = [0, 0], sizes = [64, 8], strides = [1, 1]} : vector<64x96xf32> to vector<64x8xf32>
    %35 = vector.shape_cast %34 : vector<64x8xf32> to vector<4x16x8xf32>
    %36 = arith.truncf %35 : vector<4x16x8xf32> to vector<4x16x8xbf16>
    %37 = vector.extract_strided_slice %30 {offsets = [0, 32], sizes = [64, 8], strides = [1, 1]} : vector<64x96xf32> to vector<64x8xf32>
    %38 = vector.shape_cast %37 : vector<64x8xf32> to vector<4x16x8xf32>
    %39 = arith.truncf %38 : vector<4x16x8xf32> to vector<4x16x8xbf16>
    %40 = vector.extract_strided_slice %30 {offsets = [0, 64], sizes = [64, 8], strides = [1, 1]} : vector<64x96xf32> to vector<64x8xf32>
    %41 = vector.shape_cast %40 : vector<64x8xf32> to vector<4x16x8xf32>
    %42 = arith.truncf %41 : vector<4x16x8xf32> to vector<4x16x8xbf16>
    %cst_16 = arith.constant dense<0.000000e+00> : vector<4x16x16xf32>
    %43 = tpu.matmul %36, %39, %cst_16 {dimension_numbers = #tpu.dot_dimension_numbers<[2], [2], [1], [1], [0, 0, 0, 1, 1, 1], [0], [0]>} : vector<4x16x8xbf16>, vector<4x16x8xbf16>, vector<4x16x16xf32> -> vector<4x16x16xf32>
    %44 = vector.shape_cast %43 : vector<4x16x16xf32> to vector<4x1x16x16xf32>
    %c0_17 = arith.constant 0 : index
    %c0_18 = arith.constant 0 : index
    %c0_19 = arith.constant 0 : index
    %c0_20 = arith.constant 0 : index
    %45 = vector.load %arg8[%c0_17, %c0_18, %c0_19, %c0_20] : memref<4x1x16x16xf32, #tpu.memory_space<vmem>>, vector<1x1x16x16xf32>
    %46 = vector.shape_cast %45 : vector<1x1x16x16xf32> to vector<1x16x16xf32>
    %47 = vector.shape_cast %46 : vector<1x16x16xf32> to vector<1x1x16x16xf32>
    %48 = vector.broadcast %47 : vector<1x1x16x16xf32> to vector<4x1x16x16xf32>
    %49 = arith.addf %44, %48 : vector<4x1x16x16xf32>
    %50 = vector.shape_cast %49 : vector<4x1x16x16xf32> to vector<4x16x16xf32>
    %cst_21 = arith.constant dense<0xFF800000> : vector<4x16xf32>
    %51 = vector.multi_reduction <maximumf>, %50, %cst_21 [2] : vector<4x16x16xf32> to vector<4x16xf32>
    %52 = vector.shape_cast %51 : vector<4x16xf32> to vector<4x16x1xf32>
    %53 = vector.broadcast %52 : vector<4x16x1xf32> to vector<4x16x16xf32>
    %54 = arith.subf %50, %53 : vector<4x16x16xf32>
    %55 = math.exp %54 : vector<4x16x16xf32>
    %cst_22 = arith.constant dense<0.000000e+00> : vector<4x16xf32>
    %56 = vector.multi_reduction <add>, %55, %cst_22 [2] : vector<4x16x16xf32> to vector<4x16xf32>
    %57 = vector.shape_cast %56 : vector<4x16xf32> to vector<4x16x1xf32>
    %58 = tpu.reciprocal %57 : vector<4x16x1xf32> -> vector<4x16x1xf32>
    %59 = vector.broadcast %58 : vector<4x16x1xf32> to vector<4x16x16xf32>
    %60 = arith.mulf %55, %59 : vector<4x16x16xf32>
    %61 = arith.truncf %60 : vector<4x16x16xf32> to vector<4x16x16xbf16>
    %cst_23 = arith.constant dense<0.000000e+00> : vector<4x16x8xf32>
    %62 = tpu.matmul %61, %42, %cst_23 {dimension_numbers = #tpu.dot_dimension_numbers<[2], [1], [1], [2], [0, 0, 0, 1, 1, 2], [0], [0]>} : vector<4x16x16xbf16>, vector<4x16x8xbf16>, vector<4x16x8xf32> -> vector<4x16x8xf32>
    %63 = vector.shape_cast %62 : vector<4x16x8xf32> to vector<64x8xf32>
    %64 = arith.truncf %63 : vector<64x8xf32> to vector<64x8xbf16>
    %c0_24 = arith.constant 0 : index
    %c0_25 = arith.constant 0 : index
    %c0_26 = arith.constant 0 : index
    %65 = vector.load %arg6[%c0_24, %c0_25, %c0_26] : memref<4x8x32xbf16, #tpu.memory_space<vmem>>, vector<1x8x32xbf16>
    %66 = vector.shape_cast %65 : vector<1x8x32xbf16> to vector<8x32xbf16>
    %cst_27 = arith.constant dense<0.000000e+00> : vector<64x32xf32>
    %67 = tpu.matmul %64, %66, %cst_27 {dimension_numbers = #tpu.dot_dimension_numbers<[1], [0], [0], [1], [0, 0, 1, 1], [], []>} : vector<64x8xbf16>, vector<8x32xbf16>, vector<64x32xf32> -> vector<64x32xf32>
    %68 = arith.addf %33, %67 : vector<64x32xf32>
    %69 = vector.extract_strided_slice %30 {offsets = [0, 8], sizes = [64, 8], strides = [1, 1]} : vector<64x96xf32> to vector<64x8xf32>
    %70 = vector.shape_cast %69 : vector<64x8xf32> to vector<4x16x8xf32>
    %71 = arith.truncf %70 : vector<4x16x8xf32> to vector<4x16x8xbf16>
    %72 = vector.extract_strided_slice %30 {offsets = [0, 40], sizes = [64, 8], strides = [1, 1]} : vector<64x96xf32> to vector<64x8xf32>
    %73 = vector.shape_cast %72 : vector<64x8xf32> to vector<4x16x8xf32>
    %74 = arith.truncf %73 : vector<4x16x8xf32> to vector<4x16x8xbf16>
    %75 = vector.extract_strided_slice %30 {offsets = [0, 72], sizes = [64, 8], strides = [1, 1]} : vector<64x96xf32> to vector<64x8xf32>
    %76 = vector.shape_cast %75 : vector<64x8xf32> to vector<4x16x8xf32>
    %77 = arith.truncf %76 : vector<4x16x8xf32> to vector<4x16x8xbf16>
    %cst_28 = arith.constant dense<0.000000e+00> : vector<4x16x16xf32>
    %78 = tpu.matmul %71, %74, %cst_28 {dimension_numbers = #tpu.dot_dimension_numbers<[2], [2], [1], [1], [0, 0, 0, 1, 1, 1], [0], [0]>} : vector<4x16x8xbf16>, vector<4x16x8xbf16>, vector<4x16x16xf32> -> vector<4x16x16xf32>
    %79 = vector.shape_cast %78 : vector<4x16x16xf32> to vector<4x1x16x16xf32>
    %c1 = arith.constant 1 : index
    %c0_29 = arith.constant 0 : index
    %c0_30 = arith.constant 0 : index
    %c0_31 = arith.constant 0 : index
    %80 = vector.load %arg8[%c1, %c0_29, %c0_30, %c0_31] : memref<4x1x16x16xf32, #tpu.memory_space<vmem>>, vector<1x1x16x16xf32>
    %81 = vector.shape_cast %80 : vector<1x1x16x16xf32> to vector<1x16x16xf32>
    %82 = vector.shape_cast %81 : vector<1x16x16xf32> to vector<1x1x16x16xf32>
    %83 = vector.broadcast %82 : vector<1x1x16x16xf32> to vector<4x1x16x16xf32>
    %84 = arith.addf %79, %83 : vector<4x1x16x16xf32>
    %85 = vector.shape_cast %84 : vector<4x1x16x16xf32> to vector<4x16x16xf32>
    %cst_32 = arith.constant dense<0xFF800000> : vector<4x16xf32>
    %86 = vector.multi_reduction <maximumf>, %85, %cst_32 [2] : vector<4x16x16xf32> to vector<4x16xf32>
    %87 = vector.shape_cast %86 : vector<4x16xf32> to vector<4x16x1xf32>
    %88 = vector.broadcast %87 : vector<4x16x1xf32> to vector<4x16x16xf32>
    %89 = arith.subf %85, %88 : vector<4x16x16xf32>
    %90 = math.exp %89 : vector<4x16x16xf32>
    %cst_33 = arith.constant dense<0.000000e+00> : vector<4x16xf32>
    %91 = vector.multi_reduction <add>, %90, %cst_33 [2] : vector<4x16x16xf32> to vector<4x16xf32>
    %92 = vector.shape_cast %91 : vector<4x16xf32> to vector<4x16x1xf32>
    %93 = tpu.reciprocal %92 : vector<4x16x1xf32> -> vector<4x16x1xf32>
    %94 = vector.broadcast %93 : vector<4x16x1xf32> to vector<4x16x16xf32>
    %95 = arith.mulf %90, %94 : vector<4x16x16xf32>
    %96 = arith.truncf %95 : vector<4x16x16xf32> to vector<4x16x16xbf16>
    %cst_34 = arith.constant dense<0.000000e+00> : vector<4x16x8xf32>
    %97 = tpu.matmul %96, %77, %cst_34 {dimension_numbers = #tpu.dot_dimension_numbers<[2], [1], [1], [2], [0, 0, 0, 1, 1, 2], [0], [0]>} : vector<4x16x16xbf16>, vector<4x16x8xbf16>, vector<4x16x8xf32> -> vector<4x16x8xf32>
    %98 = vector.shape_cast %97 : vector<4x16x8xf32> to vector<64x8xf32>
    %99 = arith.truncf %98 : vector<64x8xf32> to vector<64x8xbf16>
    %c1_35 = arith.constant 1 : index
    %c0_36 = arith.constant 0 : index
    %c0_37 = arith.constant 0 : index
    %100 = vector.load %arg6[%c1_35, %c0_36, %c0_37] : memref<4x8x32xbf16, #tpu.memory_space<vmem>>, vector<1x8x32xbf16>
    %101 = vector.shape_cast %100 : vector<1x8x32xbf16> to vector<8x32xbf16>
    %cst_38 = arith.constant dense<0.000000e+00> : vector<64x32xf32>
    %102 = tpu.matmul %99, %101, %cst_38 {dimension_numbers = #tpu.dot_dimension_numbers<[1], [0], [0], [1], [0, 0, 1, 1], [], []>} : vector<64x8xbf16>, vector<8x32xbf16>, vector<64x32xf32> -> vector<64x32xf32>
    %103 = arith.addf %68, %102 : vector<64x32xf32>
    %104 = vector.extract_strided_slice %30 {offsets = [0, 16], sizes = [64, 8], strides = [1, 1]} : vector<64x96xf32> to vector<64x8xf32>
    %105 = vector.shape_cast %104 : vector<64x8xf32> to vector<4x16x8xf32>
    %106 = arith.truncf %105 : vector<4x16x8xf32> to vector<4x16x8xbf16>
    %107 = vector.extract_strided_slice %30 {offsets = [0, 48], sizes = [64, 8], strides = [1, 1]} : vector<64x96xf32> to vector<64x8xf32>
    %108 = vector.shape_cast %107 : vector<64x8xf32> to vector<4x16x8xf32>
    %109 = arith.truncf %108 : vector<4x16x8xf32> to vector<4x16x8xbf16>
    %110 = vector.extract_strided_slice %30 {offsets = [0, 80], sizes = [64, 8], strides = [1, 1]} : vector<64x96xf32> to vector<64x8xf32>
    %111 = vector.shape_cast %110 : vector<64x8xf32> to vector<4x16x8xf32>
    %112 = arith.truncf %111 : vector<4x16x8xf32> to vector<4x16x8xbf16>
    %cst_39 = arith.constant dense<0.000000e+00> : vector<4x16x16xf32>
    %113 = tpu.matmul %106, %109, %cst_39 {dimension_numbers = #tpu.dot_dimension_numbers<[2], [2], [1], [1], [0, 0, 0, 1, 1, 1], [0], [0]>} : vector<4x16x8xbf16>, vector<4x16x8xbf16>, vector<4x16x16xf32> -> vector<4x16x16xf32>
    %114 = vector.shape_cast %113 : vector<4x16x16xf32> to vector<4x1x16x16xf32>
    %c2 = arith.constant 2 : index
    %c0_40 = arith.constant 0 : index
    %c0_41 = arith.constant 0 : index
    %c0_42 = arith.constant 0 : index
    %115 = vector.load %arg8[%c2, %c0_40, %c0_41, %c0_42] : memref<4x1x16x16xf32, #tpu.memory_space<vmem>>, vector<1x1x16x16xf32>
    %116 = vector.shape_cast %115 : vector<1x1x16x16xf32> to vector<1x16x16xf32>
    %117 = vector.shape_cast %116 : vector<1x16x16xf32> to vector<1x1x16x16xf32>
    %118 = vector.broadcast %117 : vector<1x1x16x16xf32> to vector<4x1x16x16xf32>
    %119 = arith.addf %114, %118 : vector<4x1x16x16xf32>
    %120 = vector.shape_cast %119 : vector<4x1x16x16xf32> to vector<4x16x16xf32>
    %cst_43 = arith.constant dense<0xFF800000> : vector<4x16xf32>
    %121 = vector.multi_reduction <maximumf>, %120, %cst_43 [2] : vector<4x16x16xf32> to vector<4x16xf32>
    %122 = vector.shape_cast %121 : vector<4x16xf32> to vector<4x16x1xf32>
    %123 = vector.broadcast %122 : vector<4x16x1xf32> to vector<4x16x16xf32>
    %124 = arith.subf %120, %123 : vector<4x16x16xf32>
    %125 = math.exp %124 : vector<4x16x16xf32>
    %cst_44 = arith.constant dense<0.000000e+00> : vector<4x16xf32>
    %126 = vector.multi_reduction <add>, %125, %cst_44 [2] : vector<4x16x16xf32> to vector<4x16xf32>
    %127 = vector.shape_cast %126 : vector<4x16xf32> to vector<4x16x1xf32>
    %128 = tpu.reciprocal %127 : vector<4x16x1xf32> -> vector<4x16x1xf32>
    %129 = vector.broadcast %128 : vector<4x16x1xf32> to vector<4x16x16xf32>
    %130 = arith.mulf %125, %129 : vector<4x16x16xf32>
    %131 = arith.truncf %130 : vector<4x16x16xf32> to vector<4x16x16xbf16>
    %cst_45 = arith.constant dense<0.000000e+00> : vector<4x16x8xf32>
    %132 = tpu.matmul %131, %112, %cst_45 {dimension_numbers = #tpu.dot_dimension_numbers<[2], [1], [1], [2], [0, 0, 0, 1, 1, 2], [0], [0]>} : vector<4x16x16xbf16>, vector<4x16x8xbf16>, vector<4x16x8xf32> -> vector<4x16x8xf32>
    %133 = vector.shape_cast %132 : vector<4x16x8xf32> to vector<64x8xf32>
    %134 = arith.truncf %133 : vector<64x8xf32> to vector<64x8xbf16>
    %c2_46 = arith.constant 2 : index
    %c0_47 = arith.constant 0 : index
    %c0_48 = arith.constant 0 : index
    %135 = vector.load %arg6[%c2_46, %c0_47, %c0_48] : memref<4x8x32xbf16, #tpu.memory_space<vmem>>, vector<1x8x32xbf16>
    %136 = vector.shape_cast %135 : vector<1x8x32xbf16> to vector<8x32xbf16>
    %cst_49 = arith.constant dense<0.000000e+00> : vector<64x32xf32>
    %137 = tpu.matmul %134, %136, %cst_49 {dimension_numbers = #tpu.dot_dimension_numbers<[1], [0], [0], [1], [0, 0, 1, 1], [], []>} : vector<64x8xbf16>, vector<8x32xbf16>, vector<64x32xf32> -> vector<64x32xf32>
    %138 = arith.addf %103, %137 : vector<64x32xf32>
    %139 = vector.extract_strided_slice %30 {offsets = [0, 24], sizes = [64, 8], strides = [1, 1]} : vector<64x96xf32> to vector<64x8xf32>
    %140 = vector.shape_cast %139 : vector<64x8xf32> to vector<4x16x8xf32>
    %141 = arith.truncf %140 : vector<4x16x8xf32> to vector<4x16x8xbf16>
    %142 = vector.extract_strided_slice %30 {offsets = [0, 56], sizes = [64, 8], strides = [1, 1]} : vector<64x96xf32> to vector<64x8xf32>
    %143 = vector.shape_cast %142 : vector<64x8xf32> to vector<4x16x8xf32>
    %144 = arith.truncf %143 : vector<4x16x8xf32> to vector<4x16x8xbf16>
    %145 = vector.extract_strided_slice %30 {offsets = [0, 88], sizes = [64, 8], strides = [1, 1]} : vector<64x96xf32> to vector<64x8xf32>
    %146 = vector.shape_cast %145 : vector<64x8xf32> to vector<4x16x8xf32>
    %147 = arith.truncf %146 : vector<4x16x8xf32> to vector<4x16x8xbf16>
    %cst_50 = arith.constant dense<0.000000e+00> : vector<4x16x16xf32>
    %148 = tpu.matmul %141, %144, %cst_50 {dimension_numbers = #tpu.dot_dimension_numbers<[2], [2], [1], [1], [0, 0, 0, 1, 1, 1], [0], [0]>} : vector<4x16x8xbf16>, vector<4x16x8xbf16>, vector<4x16x16xf32> -> vector<4x16x16xf32>
    %149 = vector.shape_cast %148 : vector<4x16x16xf32> to vector<4x1x16x16xf32>
    %c3 = arith.constant 3 : index
    %c0_51 = arith.constant 0 : index
    %c0_52 = arith.constant 0 : index
    %c0_53 = arith.constant 0 : index
    %150 = vector.load %arg8[%c3, %c0_51, %c0_52, %c0_53] : memref<4x1x16x16xf32, #tpu.memory_space<vmem>>, vector<1x1x16x16xf32>
    %151 = vector.shape_cast %150 : vector<1x1x16x16xf32> to vector<1x16x16xf32>
    %152 = vector.shape_cast %151 : vector<1x16x16xf32> to vector<1x1x16x16xf32>
    %153 = vector.broadcast %152 : vector<1x1x16x16xf32> to vector<4x1x16x16xf32>
    %154 = arith.addf %149, %153 : vector<4x1x16x16xf32>
    %155 = vector.shape_cast %154 : vector<4x1x16x16xf32> to vector<4x16x16xf32>
    %cst_54 = arith.constant dense<0xFF800000> : vector<4x16xf32>
    %156 = vector.multi_reduction <maximumf>, %155, %cst_54 [2] : vector<4x16x16xf32> to vector<4x16xf32>
    %157 = vector.shape_cast %156 : vector<4x16xf32> to vector<4x16x1xf32>
    %158 = vector.broadcast %157 : vector<4x16x1xf32> to vector<4x16x16xf32>
    %159 = arith.subf %155, %158 : vector<4x16x16xf32>
    %160 = math.exp %159 : vector<4x16x16xf32>
    %cst_55 = arith.constant dense<0.000000e+00> : vector<4x16xf32>
    %161 = vector.multi_reduction <add>, %160, %cst_55 [2] : vector<4x16x16xf32> to vector<4x16xf32>
    %162 = vector.shape_cast %161 : vector<4x16xf32> to vector<4x16x1xf32>
    %163 = tpu.reciprocal %162 : vector<4x16x1xf32> -> vector<4x16x1xf32>
    %164 = vector.broadcast %163 : vector<4x16x1xf32> to vector<4x16x16xf32>
    %165 = arith.mulf %160, %164 : vector<4x16x16xf32>
    %166 = arith.truncf %165 : vector<4x16x16xf32> to vector<4x16x16xbf16>
    %cst_56 = arith.constant dense<0.000000e+00> : vector<4x16x8xf32>
    %167 = tpu.matmul %166, %147, %cst_56 {dimension_numbers = #tpu.dot_dimension_numbers<[2], [1], [1], [2], [0, 0, 0, 1, 1, 2], [0], [0]>} : vector<4x16x16xbf16>, vector<4x16x8xbf16>, vector<4x16x8xf32> -> vector<4x16x8xf32>
    %168 = vector.shape_cast %167 : vector<4x16x8xf32> to vector<64x8xf32>
    %169 = arith.truncf %168 : vector<64x8xf32> to vector<64x8xbf16>
    %c3_57 = arith.constant 3 : index
    %c0_58 = arith.constant 0 : index
    %c0_59 = arith.constant 0 : index
    %170 = vector.load %arg6[%c3_57, %c0_58, %c0_59] : memref<4x8x32xbf16, #tpu.memory_space<vmem>>, vector<1x8x32xbf16>
    %171 = vector.shape_cast %170 : vector<1x8x32xbf16> to vector<8x32xbf16>
    %cst_60 = arith.constant dense<0.000000e+00> : vector<64x32xf32>
    %172 = tpu.matmul %169, %171, %cst_60 {dimension_numbers = #tpu.dot_dimension_numbers<[1], [0], [0], [1], [0, 0, 1, 1], [], []>} : vector<64x8xbf16>, vector<8x32xbf16>, vector<64x32xf32> -> vector<64x32xf32>
    %173 = arith.addf %138, %172 : vector<64x32xf32>
    %c0_61 = arith.constant 0 : index
    %c0_62 = arith.constant 0 : index
    %174 = vector.load %arg9[%c0_61, %c0_62] : memref<64x32xf32, #tpu.memory_space<vmem>>, vector<64x32xf32>
    tpu.vector_store %arg9[%c0_61, %c0_62], %173 {strides = array<i32>} : memref<64x32xf32, #tpu.memory_space<vmem>>, vector<64x32xf32>,
    return
  }
  func.func @transform_0(%arg0: i32) -> (i32, i32) {
    %c0_i32 = arith.constant 0 : i32
    %c0_i32_0 = arith.constant 0 : i32
    return %arg0, %c0_i32 : i32, i32
  }
  func.func @transform_1(%arg0: i32) -> (i32, i32) {
    %c0_i32 = arith.constant 0 : i32
    %c0_i32_0 = arith.constant 0 : i32
    %c0_i32_1 = arith.constant 0 : i32
    return %c0_i32, %c0_i32_0 : i32, i32
  }
  func.func @transform_2(%arg0: i32) -> (i32, i32) {
    %c0_i32 = arith.constant 0 : i32
    %c0_i32_0 = arith.constant 0 : i32
    %c0_i32_1 = arith.constant 0 : i32
    return %c0_i32, %c0_i32_0 : i32, i32
  }
  func.func @transform_3(%arg0: i32) -> (i32, i32) {
    %c0_i32 = arith.constant 0 : i32
    %c0_i32_0 = arith.constant 0 : i32
    %c0_i32_1 = arith.constant 0 : i32
    return %c0_i32, %c0_i32_0 : i32, i32
  }
  func.func @transform_4(%arg0: i32) -> (i32, i32) {
    %c0_i32 = arith.constant 0 : i32
    %c0_i32_0 = arith.constant 0 : i32
    %c0_i32_1 = arith.constant 0 : i32
    return %c0_i32, %c0_i32_0 : i32, i32
  }
  func.func @transform_5(%arg0: i32) -> (i32, i32, i32) {
    %c0_i32 = arith.constant 0 : i32
    %c0_i32_0 = arith.constant 0 : i32
    %c0_i32_1 = arith.constant 0 : i32
    %c0_i32_2 = arith.constant 0 : i32
    return %c0_i32, %c0_i32_0, %c0_i32_1 : i32, i32, i32
  }
  func.func @transform_6(%arg0: i32) -> (i32, i32) {
    %c0_i32 = arith.constant 0 : i32
    %c0_i32_0 = arith.constant 0 : i32
    %c0_i32_1 = arith.constant 0 : i32
    return %c0_i32, %c0_i32_0 : i32, i32
  }
  func.func @transform_7(%arg0: i32) -> (i32, i32, i32, i32) {
    %c0_i32 = arith.constant 0 : i32
    %c0_i32_0 = arith.constant 0 : i32
    %c0_i32_1 = arith.constant 0 : i32
    %c0_i32_2 = arith.constant 0 : i32
    %c0_i32_3 = arith.constant 0 : i32
    return %c0_i32, %c0_i32_0, %c0_i32_1, %c0_i32_2 : i32, i32, i32, i32
  }
  func.func @transform_8(%arg0: i32) -> (i32, i32) {
    %c0_i32 = arith.constant 0 : i32
    %c0_i32_0 = arith.constant 0 : i32
    return %arg0, %c0_i32 : i32, i32
  }
}

</mosaic_0001>

<bundles_post_ra>
// kernel: tpu_custom_call.1
= control target key start
LH: loop header
LB: loop body
LE: loop exit
PB: predicated region body
PF: predicated region fallthrough
CT: control target
= control target key end

     0   :  { %s3655_s27 = smov 0   ;;  %s4325_s0 = inlined_call_operand.vmem [shape: f32[128,32], index: 0, kind: input, shape index: {}]   ;;  %s4326_s1 = inlined_call_operand.vmem [shape: f32[1,32], index: 1, kind: input, shape index: {}]   ;;  %s4327_s2 = inlined_call_operand.vmem [shape: f32[1,32], index: 2, kind: input, shape index: {}]   ;;  %s4328_s3 = inlined_call_operand.vmem [shape: bf16[32,96], index: 3, kind: input, shape index: {}]   ;;  %s4329_s4 = inlined_call_operand.vmem [shape: f32[1,96], index: 4, kind: input, shape index: {}]   ;;  %s4330_s5 = inlined_call_operand.vmem [shape: bf16[4,8,32], index: 5, kind: input, shape index: {}]   ;;  %s4331_s6 = inlined_call_operand.vmem [shape: f32[1,32], index: 6, kind: input, shape index: {}]   ;;  %s4332_s7 = inlined_call_operand.vmem [shape: f32[4,1,16,16], index: 7, kind: input, shape index: {}]   ;;  %s4333_s8 = inlined_call_operand.vmem [shape: f32[128,32], index: 8, kind: output, shape index: {}]  }
   0x1 LB: > { %s2994_s28 = sadd.s32 4294967295, %s3595_s27   ;;  %p2998_p0 = scmp.ge.s32.totalorder %s3595_s27, 1  ;;  %s3595_s27 = sphi %s3655_s27, %s18_s27  }
   0x2   : > { %p263_p1 = scmp.lt.s32.totalorder %s3595_s27, 3 }
   0x4   : > { %p264_p2 = pnand %p2998_p0, %p263_p1 }
   0x5   : > { %s2999_s29 = sshll.u32 (!%p264_p2), %s2994_s28, 3  ;;  %s3599_s22 = smov (!%p264_p2), 96  }
   0x6   : > { %267 = sbr.rel (%p264_p2) target bundleno = 3988 (0xf94), region = 52  ;;  %p298_p3 = scmp.lt.s32.totalorder (!%p264_p2), %s2999_s29, 15 }
   0x7   : > { %s3600_s28 = smov (!%p264_p2), 64   ;;  %s3601_s9 = smov (!%p264_p2), 88  }
   0x8   : > { %s3602_s10 = smov (!%p264_p2), 120   ;;  %s3603_s18 = smov (!%p264_p2), 56  }
   0x9   : > { %s3604_s19 = smov (!%p264_p2), 80   ;;  %s3605_s20 = smov (!%p264_p2), 112  }
   0xa   : > { %s3608_s12 = smov (!%p264_p2), 104  }
   0xb   : > { %s4335_s29 = smov (!%p298_p3, %s2999_s29), 15  ;;  %vm318_vm0 = vcmask 261120   ;;  %v3435_v56 = vld [vmem:[%s4328_s3 + $0x8] sm:$0xff]   ;;  %v3436_v57 = vld [vmem:[%s4328_s3] sm:$0xff]   ;;  %vm3598_vm1 = vmmov 0   ;;  %vm580_vm2 = vcmask 64512  }
   0xc   : > { %s3000_s30 = sshll.u32 %s4335_s29, 3  ;;  %3162 = vmatprep.subr.bf16.mxu0 %v3435_v56  ;;  %3406 = vmatprep.subr.bf16.mxu1 %v3435_v56  ;;  %vm788_vm3 = vcmask 130048   ;;  %vm1086_vm4 = vcmask 1043456  }
   0xd   : > { %s3671_s11 = scalar_lea.vmem %s4325_s0, %s3000_s30  ;;  %3163 = vmatpush3.bf16.msra.mxu0 %v3435_v56  ;;  %3408 = vmatpush3.bf16.msra.mxu1 %v3435_v56  ;;  %s307_s24 = scalar_lea.vmem %s4333_s8, %s3000_s30 }
   0xe   : > { %v310_v0 = vld [vmem:[%s3671_s11] sm:$0xff]  ;;  %v312_v1 = vld [vmem:[%s3671_s11 + $0x10] sm:$0xff]  ;;  %v311_v2 = vld [vmem:[%s3671_s11 + $0x8] sm:$0xff]  ;;  %3164 = vmatprep.subr.bf16.mxu0 %v3436_v57  ;;  %3407 = vmatprep.subr.bf16.mxu1 %v3436_v57 }
   0xf   : > { %v319_v3 = vsel %vm318_vm0, %v310_v0, 0.0  ;;  %v325_v4 = vsel %vm318_vm0, %v312_v1, 0.0  ;;  %v313_v5 = vld [vmem:[%s3671_s11 + $0x18] sm:$0xff]  ;;  %v322_v6 = vsel %vm318_vm0, %v311_v2, 0.0  ;;  %v314_v8 = vld [vmem:[%s3671_s11 + $0x20] sm:$0xff]  ;;  %v315_v9 = vld [vmem:[%s3671_s11 + $0x28] sm:$0xff] }
  0x10   : > { %320 = vadd.xlane.f32.xlu0 %v319_v3  ;;  %326 = vadd.xlane.f32.xlu1 %v325_v4  ;;  %v328_v7 = vsel %vm318_vm0, %v313_v5, 0.0  ;;  %v331_v10 = vsel %vm318_vm0, %v314_v8, 0.0  ;;  %v334_v11 = vsel %vm318_vm0, %v315_v9, 0.0  ;;  %v316_v12 = vld [vmem:[%s3671_s11 + $0x30] sm:$0xff]  ;;  %v317_v13 = vld [vmem:[%s3671_s11 + $0x38] sm:$0xff] }
  0x11   : > { %v337_v14 = vsel %vm318_vm0, %v316_v12, 0.0  ;;  %v340_v15 = vsel %vm318_vm0, %v317_v13, 0.0  ;;  %3165 = vmatpush3.bf16.msra.mxu0 %v3436_v57  ;;  %3409 = vmatpush3.bf16.msra.mxu1 %v3436_v57 }
  0x14   : > { %323 = vadd.xlane.f32.xlu0 %v322_v6  ;;  %329 = vadd.xlane.f32.xlu1 %v328_v7 }
  0x18   : > { %332 = vadd.xlane.f32.xlu0 %v331_v10  ;;  %335 = vadd.xlane.f32.xlu1 %v334_v11 }
  0x1c   : > { %338 = vadd.xlane.f32.xlu0 %v337_v14  ;;  %341 = vadd.xlane.f32.xlu1 %v340_v15 }
  0x99   : > { %v321_v16 = vpop.xlane.xlu0 %320  ;;  %v327_v17 = vpop.xlane.xlu1 %326 }
  0x9a   : > { %v344_v18 = vmul.f32 0.03125, %v321_v16  ;;  %v346_v19 = vmul.f32 0.03125, %v327_v17 }
  0x9c   : > { %v3689_v20 = vsub.f32 %v310_v0, %v344_v18  ;;  %v3691_v21 = vsub.f32 %v312_v1, %v346_v19 }
  0x9d   : > { %v324_v22 = vpop.xlane.xlu0 %323  ;;  %v330_v23 = vpop.xlane.xlu1 %329 }
  0x9e   : > { %v345_v24 = vmul.f32 0.03125, %v324_v22  ;;  %v347_v25 = vmul.f32 0.03125, %v330_v23  ;;  %v360_v26 = vmul.f32 %v3689_v20, %v3689_v20  ;;  %v362_v27 = vmul.f32 %v3691_v21, %v3691_v21  ;;  %v3003_v22 = vld [vmem:[%s4326_s1] ss:$0 sm:$0xff] }
  0xa0   : > { %v3697_v28 = vsub.f32 %v311_v2, %v345_v24  ;;  %v3699_v29 = vsub.f32 %v313_v5, %v347_v25  ;;  %v368_v30 = vsel %vm318_vm0, %v360_v26, 0.0  ;;  %v374_v33 = vsel %vm318_vm0, %v362_v27, 0.0  ;;  %v3004_v27 = vld [vmem:[%s4327_s2] ss:$0 sm:$0xff] }
  0xa1   : > { %369 = vadd.xlane.f32.xlu0 %v368_v30  ;;  %v333_v31 = vpop.xlane.xlu0 %332  ;;  %v336_v32 = vpop.xlane.xlu1 %335 }
  0xa2   : > { %v348_v34 = vmul.f32 0.03125, %v333_v31  ;;  %v349_v35 = vmul.f32 0.03125, %v336_v32  ;;  %v361_v36 = vmul.f32 %v3697_v28, %v3697_v28  ;;  %v363_v37 = vmul.f32 %v3699_v29, %v3699_v29 }
  0xa4   : > { %v3707_v38 = vsub.f32 %v314_v8, %v348_v34  ;;  %v3709_v39 = vsub.f32 %v315_v9, %v349_v35  ;;  %v371_v40 = vsel %vm318_vm0, %v361_v36, 0.0  ;;  %v377_v43 = vsel %vm318_vm0, %v363_v37, 0.0 }
  0xa5   : > { %375 = vadd.xlane.f32.xlu0 %v374_v33  ;;  %372 = vadd.xlane.f32.xlu1 %v371_v40  ;;  %v339_v41 = vpop.xlane.xlu0 %338  ;;  %v342_v42 = vpop.xlane.xlu1 %341 }
  0xa6   : > { %v350_v44 = vmul.f32 0.03125, %v339_v41  ;;  %v351_v45 = vmul.f32 0.03125, %v342_v42  ;;  %v364_v46 = vmul.f32 %v3707_v38, %v3707_v38  ;;  %v365_v47 = vmul.f32 %v3709_v39, %v3709_v39 }
  0xa8   : > { %v3717_v48 = vsub.f32 %v316_v12, %v350_v44  ;;  %v3719_v49 = vsub.f32 %v317_v13, %v351_v45  ;;  %v380_v50 = vsel %vm318_vm0, %v364_v46, 0.0  ;;  %v383_v51 = vsel %vm318_vm0, %v365_v47, 0.0 }
  0xa9   : > { %378 = vadd.xlane.f32.xlu1 %v377_v43  ;;  %381 = vadd.xlane.f32.xlu0 %v380_v50 }
  0xaa   : > { %v366_v52 = vmul.f32 %v3717_v48, %v3717_v48  ;;  %v367_v53 = vmul.f32 %v3719_v49, %v3719_v49 }
  0xac   : > { %v386_v54 = vsel %vm318_vm0, %v366_v52, 0.0  ;;  %v389_v55 = vsel %vm318_vm0, %v367_v53, 0.0 }
  0xad   : > { %384 = vadd.xlane.f32.xlu1 %v383_v51  ;;  %387 = vadd.xlane.f32.xlu0 %v386_v54 }
  0xb1   : > { %390 = vadd.xlane.f32.xlu1 %v389_v55 }
 0x12a   : > { %v370_v58 = vpop.xlane.xlu0 %369 }
 0x12b   : > { %v392_v59 = vmul.f32 0.03125, %v370_v58 }
 0x12d   : > { %v400_v60 = vadd.f32 1e-05, %v392_v59 }
 0x12e   : > { %v373_v61 = vpop.xlane.xlu1 %372  ;;  %v376_v62 = vpop.xlane.xlu0 %375 }
 0x12f   : > { %3437 = vrsqrt.f32 %v400_v60  ;;  %v393_v63 = vmul.f32 0.03125, %v373_v61  ;;  %v394_v0 = vmul.f32 0.03125, %v376_v62 }
 0x131   : > { %v401_v1 = vadd.f32 1e-05, %v393_v63  ;;  %v402_v2 = vadd.f32 1e-05, %v394_v0 }
 0x132   : > { %v379_v3 = vpop.xlane.xlu1 %378  ;;  %v382_v4 = vpop.xlane.xlu0 %381 }
 0x133   : > { %3439 = vrsqrt.f32 %v401_v1  ;;  %v395_v5 = vmul.f32 0.03125, %v379_v3  ;;  %v396_v6 = vmul.f32 0.03125, %v382_v4 }
 0x134   : > { %3441 = vrsqrt.f32 %v402_v2 }
 0x135   : > { %v403_v7 = vadd.f32 1e-05, %v395_v5  ;;  %v404_v8 = vadd.f32 1e-05, %v396_v6 }
 0x136   : > { %v385_v9 = vpop.xlane.xlu1 %384  ;;  %v388_v10 = vpop.xlane.xlu0 %387 }
 0x137   : > { %3443 = vrsqrt.f32 %v403_v7  ;;  %v397_v11 = vmul.f32 0.03125, %v385_v9  ;;  %v398_v12 = vmul.f32 0.03125, %v388_v10 }
 0x138   : > { %3445 = vrsqrt.f32 %v404_v8 }
 0x139   : > { %v405_v13 = vadd.f32 1e-05, %v397_v11  ;;  %v406_v14 = vadd.f32 1e-05, %v398_v12 }
 0x13a   : > { %v391_v15 = vpop.xlane.xlu1 %390 }
 0x13b   : > { %3447 = vrsqrt.f32 %v405_v13  ;;  %v399_v16 = vmul.f32 0.03125, %v391_v15 }
 0x13c   : > { %v3438_v17 = vpop.eup %3437  ;;  %3449 = vrsqrt.f32 %v406_v14 }
 0x13d   : > { %v407_v18 = vadd.f32 1e-05, %v399_v16  ;;  %v416_v19 = vmul.f32 %v3438_v17, %v3689_v20 }
 0x13f   : > { %3451 = vrsqrt.f32 %v407_v18  ;;  %v431_v26 = vmul.f32 %v3003_v22, %v416_v19 }
 0x140   : > { %v3440_v23 = vpop.eup %3439 }
 0x141   : > { %v3442_v24 = vpop.eup %3441  ;;  %v417_v25 = vmul.f32 %v3440_v23, %v3697_v28  ;;  %v446_v20 = vadd.f32 %v3004_v27, %v431_v26 }
 0x142   : > { %v418_v30 = vmul.f32 %v3442_v24, %v3691_v21  ;;  %v778_v24 = vld [vmem:[%s4332_s7] sm:$0xff] }
 0x143   : > { %v432_v31 = vmul.f32 %v3003_v22, %v417_v25 }
 0x144   : > { %v3444_v32 = vpop.eup %3443  ;;  %v433_v36 = vmul.f32 %v3003_v22, %v418_v30  ;;  %v779_v30 = vld [vmem:[%s4332_s7 + $0x8] sm:$0xff] }
 0x145   : > { %v3446_v33 = vpop.eup %3445  ;;  %v447_v34 = vadd.f32 %v3004_v27, %v432_v31  ;;  %v419_v35 = vmul.f32 %v3444_v32, %v3699_v29 }
 0x146   : > { %v420_v37 = vmul.f32 %v3446_v33, %v3707_v38  ;;  %v448_v43 = vadd.f32 %v3004_v27, %v433_v36 }
 0x147   : > { %v454_v40 = vpack.c.bf16 %v447_v34, %v446_v20  ;;  %v434_v41 = vmul.f32 %v3003_v22, %v419_v35 }
 0x148   : > { %v3448_v28 = vpop.eup %3447  ;;  %v435_v45 = vmul.f32 %v3003_v22, %v420_v37 }
 0x149   : > { %v3450_v42 = vpop.eup %3449  ;;  %3166 = vmatprep.mubr.msk.bf16.mxu0 %vm318_vm0, %v454_v40  ;;  %v449_v44 = vadd.f32 %v3004_v27, %v434_v41  ;;  %v421_v21 = vmul.f32 %v3448_v28, %v3709_v39 }
 0x14a   : > { %v422_v46 = vmul.f32 %v3450_v42, %v3717_v48  ;;  %v450_v29 = vadd.f32 %v3004_v27, %v435_v45  ;;  %v3597_v48 = vmov 0.0  }
 0x14b   : > { %v455_v47 = vpack.c.bf16 %v449_v44, %v448_v43  ;;  %v436_v50 = vmul.f32 %v3003_v22, %v421_v21  ;;  %3174 = vmatprep.subr.bf16.mxu1 %v3597_v48  ;;  %3186 = vmatprep.subr.bf16.mxu0 %v3597_v48 }
 0x14c   : > { %v3452_v51 = vpop.eup %3451  ;;  %v437_v53 = vmul.f32 %v3003_v22, %v422_v46 }
 0x14d   : > { %3167 = vmatmul.mubr.msk.bf16.vlgmr.msra.gmra.mxu0 %vm318_vm0, %v455_v47  ;;  %v451_v38 = vadd.f32 %v3004_v27, %v436_v50  ;;  %v423_v52 = vmul.f32 %v3452_v51, %v3719_v49  ;;  %v3005_v49 = vld [vmem:[%s4329_s4] ss:$0 sm:$0xff] }
 0x14e   : > { %v452_v56 = vadd.f32 %v3004_v27, %v437_v53  ;;  %3188 = vmatprep.mubr.msk.bf16.mxu0 %vm3598_vm1, %v3597_v48 }
 0x14f   : > { %v456_v54 = vpack.c.bf16 %v451_v38, %v450_v29  ;;  %v438_v55 = vmul.f32 %v3003_v22, %v423_v52 }
 0x151   : > { %3170 = vmatprep.mubr.msk.bf16.mxu1 %vm318_vm0, %v456_v54  ;;  %v453_v57 = vadd.f32 %v3004_v27, %v438_v55 }
 0x153   : > { %v457_v39 = vpack.c.bf16 %v453_v57, %v452_v56 }
 0x155   : > { %3171 = vmatmul.mubr.msk.bf16.vlgmr.msra.gmra.mxu1 %vm318_vm0, %v457_v39 }
 0x156   : > { %3176 = vmatprep.mubr.msk.bf16.mxu1 %vm3598_vm1, %v3597_v48 }
 0x20d   : > { %v3168_v58 = vpop.f32.mrf.mxu0 }
 0x20e   : > { %v536_v61 = vadd.f32 %v3168_v58, %v3005_v49 }
 0x20f   : > { %v527_v59 = vpop.f32.mrf.mxu0 }
 0x210   : > { %v528_v0 = vadd.f32 %v3005_v49, %v527_v59 }
 0x211   : > { %v3169_v60 = vpop.f32.mrf.mxu0 }
 0x212   : > { %v539_v62 = vadd.f32 %v3169_v60, %v3005_v49 }
 0x213   : > { %v530_v63 = vpop.f32.mrf.mxu0 }
 0x214   : > { %v3762_v1 = vpack.c.bf16 %v539_v62, %v536_v61  ;;  %v531_v2 = vadd.f32 %v3005_v49, %v530_v63 }
 0x215   : > { %v3172_v3 = vpop.f32.mrf.mxu1 }
 0x216   : > { %v3764_v4 = vpack.c.bf16 %v531_v2, %v528_v0  ;;  %629 = vrot.lane.b32.xlu1 %v3762_v1, %s3599_s22  ;;  %v552_v12 = vadd.f32 %v3172_v3, %v3005_v49 }
 0x217   : > { %v543_v5 = vpop.f32.mrf.mxu1 }
 0x218   : > { %578 = vrot.lane.b32.xlu0 %v3764_v4, %s3599_s22  ;;  %v544_v8 = vadd.f32 %v3005_v49, %v543_v5 }
 0x219   : > { %v3173_v6 = vpop.f32.mrf.mxu1 }
 0x21a   : > { %v555_v10 = vadd.f32 %v3173_v6, %v3005_v49 }
 0x21b   : > { %v546_v7 = vpop.f32.mrf.mxu1 }
 0x21c   : > { %v547_v9 = vadd.f32 %v3005_v49, %v546_v7  ;;  %v3771_v13 = vpack.c.bf16 %v555_v10, %v552_v12 }
 0x21e   : > { %v3768_v11 = vpack.c.bf16 %v547_v9, %v544_v8 }
 0x220   : > { %679 = vrot.lane.b32.xlu1 %v3768_v11, %s3599_s22 }
 0x224   : > { %729 = vrot.lane.b32.xlu1 %v3771_v13, %s3599_s22 }
 0x288   : > { %v630_v16 = vpop.permute.xlu1 %629 }
 0x289   : > { %v635_v18 = vsel %vm580_vm2, %v630_v16, 0 }
 0x28a   : > { %v579_v14 = vpop.permute.xlu0 %578 }
 0x28b   : > { %v585_v15 = vsel %vm580_vm2, %v579_v14, 0 }
 0x28c   : > { %3175 = vmatpush3.bf16.xpose.msra.mxu1 %v585_v15 }
 0x28d   : > { %3180 = vmatprep.subr.bf16.mxu1 %v3597_v48 }
 0x292   : > { %v680_v17 = vpop.permute.xlu1 %679 }
 0x293   : > { %v685_v19 = vsel %vm580_vm2, %v680_v17, 0  ;;  %3177 = vmatmul.mubr.msk.bf16.vlgmr.msra.gmra.mxu1 %vm580_vm2, %v3764_v4 }
 0x294   : > { %3181 = vmatpush3.bf16.xpose.msra.mxu1 %v635_v18  ;;  %3187 = vmatpush3.bf16.xpose.msra.mxu0 %v685_v19 }
 0x295   : > { %3182 = vmatprep.mubr.msk.bf16.mxu1 %vm3598_vm1, %v3597_v48  ;;  %3192 = vmatprep.subr.bf16.mxu1 %v3597_v48 }
 0x296   : > { %3198 = vmatprep.subr.bf16.mxu0 %v3597_v48  ;;  %v730_v22 = vpop.permute.xlu1 %729 }
 0x297   : > { %v735_v23 = vsel %vm580_vm2, %v730_v22, 0 }
 0x29b   : > { %3183 = vmatmul.mubr.msk.bf16.vlgmr.msra.gmra.mxu1 %vm580_vm2, %v3762_v1  ;;  %3189 = vmatmul.mubr.msk.bf16.vlgmr.msra.gmra.mxu0 %vm580_vm2, %v3768_v11 }
 0x29c   : > { %3193 = vmatpush3.bf16.xpose.msra.mxu1 %v735_v23  ;;  %3194 = vmatprep.mubr.msk.bf16.mxu1 %vm3598_vm1, %v3597_v48 }
 0x29d   : > { %3204 = vmatprep.subr.bf16.mxu1 %v3597_v48  ;;  %3200 = vmatprep.mubr.msk.bf16.mxu0 %vm3598_vm1, %v3597_v48 }
 0x2a3   : > { %3195 = vmatmul.mubr.msk.bf16.vlgmr.msra.gmra.mxu1 %vm580_vm2, %v3771_v13 }
 0x2a4   : > { %3206 = vmatprep.mubr.msk.bf16.mxu1 %vm3598_vm1, %v3597_v48 }
 0x353   : > { %v621_v25 = vpop.f32.mrf.mxu1 }
 0x354   : > { %v780_v26 = vadd.f32 %v778_v24, %v621_v25 }
 0x355   : > { %v3178_v27 = vpop.f32.mrf.mxu1 }
 0x356   : > { %v789_v31 = vsel %vm788_vm3, %v780_v26, -inf }
 0x357   : > { %790 = vmax.xlane.f32.xlu0 %v789_v31  ;;  %v624_v32 = vpop.f32.mrf.mxu1 }
 0x358   : > { %v781_v33 = vadd.f32 %v779_v30, %v624_v32 }
 0x359   : > { %v3179_v20 = vpop.f32.mrf.mxu1 }
 0x35a   : > { %v792_v34 = vsel %vm788_vm3, %v781_v33, -inf }
 0x35b   : > { %v721_v35 = vpop.f32.mrf.mxu0  ;;  %793 = vmax.xlane.f32.xlu1 %v792_v34  ;;  %v671_v36 = vpop.f32.mrf.mxu1 }
 0x35c   : > { %v782_v37 = vadd.f32 %v778_v24, %v671_v36  ;;  %v784_v47 = vadd.f32 %v778_v24, %v721_v35 }
 0x35d   : > { %v3184_v40 = vpop.f32.mrf.mxu1  ;;  %v3190_v41 = vpop.f32.mrf.mxu0 }
 0x35e   : > { %v795_v28 = vsel %vm788_vm3, %v782_v37, -inf  ;;  %v801_v53 = vsel %vm788_vm3, %v784_v47, -inf }
 0x35f   : > { %v724_v42 = vpop.f32.mrf.mxu0  ;;  %796 = vmax.xlane.f32.xlu0 %v795_v28  ;;  %v674_v43 = vpop.f32.mrf.mxu1 }
 0x360   : > { %v785_v44 = vadd.f32 %v779_v30, %v724_v42  ;;  %v783_v21 = vadd.f32 %v779_v30, %v674_v43 }
 0x361   : > { %v3185_v45 = vpop.f32.mrf.mxu1  ;;  %v3191_v46 = vpop.f32.mrf.mxu0 }
 0x362   : > { %v804_v50 = vsel %vm788_vm3, %v785_v44, -inf  ;;  %v798_v51 = vsel %vm788_vm3, %v783_v21, -inf }
 0x363   : > { %805 = vmax.xlane.f32.xlu1 %v804_v50  ;;  %799 = vmax.xlane.f32.xlu0 %v798_v51  ;;  %v771_v29 = vpop.f32.mrf.mxu1 }
 0x364   : > { %v786_v52 = vadd.f32 %v778_v24, %v771_v29 }
 0x365   : > { %v3196_v38 = vpop.f32.mrf.mxu1 }
 0x366   : > { %v807_v57 = vsel %vm788_vm3, %v786_v52, -inf }
 0x367   : > { %802 = vmax.xlane.f32.xlu0 %v801_v53  ;;  %v774_v54 = vpop.f32.mrf.mxu1 }
 0x368   : > { %v3810_v55 = vadd.f32 %v779_v30, %v774_v54 }
 0x369   : > { %v3197_v56 = vpop.f32.mrf.mxu1 }
 0x36a   : > { %v810_v39 = vsel %vm788_vm3, %v3810_v55, -inf }
 0x36b   : > { %808 = vmax.xlane.f32.xlu0 %v807_v57  ;;  %811 = vmax.xlane.f32.xlu1 %v810_v39 }
 0x3e0   : > { %v791_v58 = vpop.xlane.xlu0 %790 }
 0x3e1   : > { %v813_v49 = vsub.f32 %v780_v26, %v791_v58 }
 0x3e3   : > { %v821_v59 = vmul.f32 1.442695, %v813_v49 }
 0x3e4   : > { %v794_v60 = vpop.xlane.xlu1 %793 }
 0x3e5   : > { %3453 = vpow2.f32 %v821_v59  ;;  %v814_v61 = vsub.f32 %v781_v33, %v794_v60 }
 0x3e7   : > { %v823_v62 = vmul.f32 1.442695, %v814_v61 }
 0x3e8   : > { %v797_v63 = vpop.xlane.xlu0 %796 }
 0x3e9   : > { %3455 = vpow2.f32 %v823_v62  ;;  %v815_v6 = vsub.f32 %v782_v37, %v797_v63 }
 0x3eb   : > { %v825_v14 = vmul.f32 1.442695, %v815_v6 }
 0x3ec   : > { %v806_v0 = vpop.xlane.xlu1 %805  ;;  %v800_v2 = vpop.xlane.xlu0 %799 }
 0x3ed   : > { %v818_v3 = vsub.f32 %v785_v44, %v806_v0  ;;  %v816_v5 = vsub.f32 %v783_v21, %v800_v2 }
 0x3ef   : > { %v831_v7 = vmul.f32 1.442695, %v818_v3  ;;  %v827_v8 = vmul.f32 1.442695, %v816_v5 }
 0x3f0   : > { %v803_v9 = vpop.xlane.xlu0 %802 }
 0x3f1   : > { %3457 = vpow2.f32 %v831_v7  ;;  %v817_v10 = vsub.f32 %v784_v47, %v803_v9 }
 0x3f2   : > { %v3815_v12 = vpop.eup %3453  ;;  %3459 = vpow2.f32 %v827_v8 }
 0x3f3   : > { %v829_v15 = vmul.f32 1.442695, %v817_v10  ;;  %v837_v16 = vsel %vm788_vm3, %v3815_v12, 0.0 }
 0x3f4   : > { %838 = vadd.xlane.f32.xlu0 %v837_v16  ;;  %v809_v17 = vpop.xlane.xlu0 %808  ;;  %v812_v35 = vpop.xlane.xlu1 %811 }
 0x3f5   : > { %3461 = vpow2.f32 %v829_v15  ;;  %v819_v18 = vsub.f32 %v786_v52, %v809_v17  ;;  %v820_v36 = vsub.f32 %v3810_v55, %v812_v35  ;;  %v1073_v17 = vld [vmem:[%s4330_s5] sm:$0xf] }
 0x3f6   : > { %v3456_v19 = vpop.eup %3455  ;;  %3463 = vpow2.f32 %v825_v14 }
 0x3f7   : > { %v833_v22 = vmul.f32 1.442695, %v819_v18  ;;  %v840_v23 = vsel %vm788_vm3, %v3456_v19, 0.0  ;;  %v835_v37 = vmul.f32 1.442695, %v820_v36  ;;  %v1088_v18 = vsel %vm1086_vm4, %v1073_v17, 0 }
 0x3f8   : > { %841 = vadd.xlane.f32.xlu1 %v840_v23 }
 0x3f9   : > { %3465 = vpow2.f32 %v833_v22 }
 0x3fa   : > { %3467 = vpow2.f32 %v835_v37 }
 0x3fe   : > { %v3820_v24 = vpop.eup %3457 }
 0x3ff   : > { %v852_v25 = vsel %vm788_vm3, %v3820_v24, 0.0  ;;  %v3824_v26 = vpop.eup %3459 }
 0x400   : > { %853 = vadd.xlane.f32.xlu1 %v852_v25  ;;  %v846_v31 = vsel %vm788_vm3, %v3824_v26, 0.0 }
 0x402   : > { %v3826_v27 = vpop.eup %3461 }
 0x403   : > { %v849_v30 = vsel %vm788_vm3, %v3826_v27, 0.0  ;;  %v3832_v32 = vpop.eup %3463 }
 0x404   : > { %850 = vadd.xlane.f32.xlu0 %v849_v30  ;;  %847 = vadd.xlane.f32.xlu1 %v846_v31  ;;  %v843_v33 = vsel %vm788_vm3, %v3832_v32, 0.0 }
 0x406   : > { %v3836_v20 = vpop.eup %3465 }
 0x407   : > { %v855_v34 = vsel %vm788_vm3, %v3836_v20, 0.0  ;;  %v3468_v40 = vpop.eup %3467 }
 0x408   : > { %844 = vadd.xlane.f32.xlu0 %v843_v33  ;;  %v858_v41 = vsel %vm788_vm3, %v3468_v40, 0.0 }
 0x40c   : > { %856 = vadd.xlane.f32.xlu0 %v855_v34 }
 0x415   : > { %928 = vrot.lane.b32.xlu1 %v3762_v1, %s3600_s28 }
 0x419   : > { %975 = vrot.lane.b32.xlu1 %v3768_v11, %s3600_s28 }
 0x422   : > { %881 = vrot.lane.b32.xlu0 %v3764_v4, %s3600_s28 }
 0x426   : > { %1165 = vrot.lane.b32.xlu0 %v3764_v4, %s3601_s9 }
 0x42a   : > { %1216 = vrot.lane.b32.xlu0 %v3762_v1, %s3601_s9 }
 0x42e   : > { %1214 = vrot.lane.b32.xlu0 %v3762_v1, %s3602_s10 }
 0x432   : > { %1265 = vrot.lane.b32.xlu0 %v3768_v11, %s3602_s10 }
 0x43d   : > { %859 = vadd.xlane.f32.xlu1 %v858_v41 }
 0x44e   : > { %1022 = vrot.lane.b32.xlu1 %v3771_v13, %s3600_s28 }
 0x452   : > { %1163 = vrot.lane.b32.xlu1 %v3764_v4, %s3602_s10 }
 0x456   : > { %1267 = vrot.lane.b32.xlu1 %v3768_v11, %s3601_s9 }
 0x45a   : > { %1318 = vrot.lane.b32.xlu1 %v3771_v13, %s3601_s9 }
 0x45e   : > { %1316 = vrot.lane.b32.xlu1 %v3771_v13, %s3602_s10  ;;  %s3607_s10 = smov 72  }
 0x47d   : > { %v839_v42 = vpop.xlane.xlu0 %838 }
 0x481   : > { %v842_v28 = vpop.xlane.xlu1 %841 }
 0x482   : > { %3469 = vrcp.f32 %v842_v28 }
 0x483   : > { %3471 = vrcp.f32 %v839_v42 }
 0x489   : > { %v854_v43 = vpop.xlane.xlu1 %853 }
 0x48d   : > { %v851_v44 = vpop.xlane.xlu0 %850  ;;  %v848_v21 = vpop.xlane.xlu1 %847 }
 0x48e   : > { %3473 = vrcp.f32 %v851_v44 }
 0x48f   : > { %3475 = vrcp.f32 %v848_v21  ;;  %v3470_v47 = vpop.eup %3469 }
 0x490   : > { %3477 = vrcp.f32 %v854_v43  ;;  %v3472_v51 = vpop.eup %3471  ;;  %v870_v29 = vmul.f32 %v3470_v47, %v3456_v19 }
 0x491   : > { %v845_v45 = vpop.xlane.xlu0 %844  ;;  %v929_v46 = vpop.permute.xlu1 %928  ;;  %v869_v52 = vmul.f32 %v3472_v51, %v3815_v12 }
 0x492   : > { %3479 = vrcp.f32 %v845_v45  ;;  %3205 = vmatpush3.bf16.msra.mxu1 %v929_v46  ;;  %v3029_v46 = vld [vmem:[%s4332_s7 + $0x10] sm:$0xff] }
 0x493   : > { %3216 = vmatprep.subr.bf16.mxu1 %v3597_v48  ;;  %v877_v53 = vpack.c.bf16 %v870_v29, %v869_v52  ;;  %v3030_v29 = vld [vmem:[%s4332_s7 + $0x18] sm:$0xff] }
 0x495   : > { %v857_v50 = vpop.xlane.xlu0 %856  ;;  %v976_v56 = vpop.permute.xlu1 %975 }
 0x496   : > { %3481 = vrcp.f32 %v857_v50 }
 0x499   : > { %v882_v38 = vpop.permute.xlu0 %881 }
 0x49a   : > { %3199 = vmatpush3.bf16.msra.mxu0 %v882_v38 }
 0x49b   : > { %3210 = vmatprep.subr.bf16.mxu0 %v3597_v48  ;;  %v3474_v54 = vpop.eup %3473 }
 0x49c   : > { %v3476_v55 = vpop.eup %3475  ;;  %v873_v58 = vmul.f32 %v3474_v54, %v3826_v27 }
 0x49d   : > { %3201 = vmatmul.mubr.msk.bf16.vlgmr.msra.gmra.mxu0 %vm788_vm3, %v877_v53  ;;  %v3478_v57 = vpop.eup %3477  ;;  %v872_v59 = vmul.f32 %v3476_v55, %v3824_v26  ;;  %v1166_v7 = vpop.permute.xlu0 %1165 }
 0x49e   : > { %3211 = vmatpush3.bf16.msra.mxu0 %v976_v56  ;;  %3212 = vmatprep.mubr.msk.bf16.mxu0 %vm3598_vm1, %v3597_v48  ;;  %v874_v60 = vmul.f32 %v3478_v57, %v3820_v24  ;;  %v1171_v9 = vsel %vm580_vm2, %v1166_v7, 0 }
 0x49f   : > { %v3480_v39 = vpop.eup %3479  ;;  %3410 = vmatprep.subr.msk.bf16.mxu0 %vm1086_vm4, %v1073_v17 }
 0x4a0   : > { %v871_v49 = vmul.f32 %v3480_v39, %v3832_v32  ;;  %v879_v62 = vpack.c.bf16 %v874_v60, %v873_v58 }
 0x4a1   : > { %v1217_v12 = vpop.permute.xlu0 %1216 }
 0x4a2   : > { %v878_v61 = vpack.c.bf16 %v872_v59, %v871_v49  ;;  %v1222_v15 = vsel %vm580_vm2, %v1217_v12, 0 }
 0x4a3   : > { %v3482_v2 = vpop.eup %3481 }
 0x4a4   : > { %3207 = vmatmul.mubr.msk.bf16.vlgmr.msra.gmra.mxu1 %vm788_vm3, %v878_v61  ;;  %v875_v5 = vmul.f32 %v3482_v2, %v3836_v20 }
 0x4a5   : > { %3213 = vmatmul.mubr.msk.bf16.vlgmr.msra.gmra.mxu0 %vm788_vm3, %v879_v62  ;;  %3218 = vmatprep.mubr.msk.bf16.mxu1 %vm3598_vm1, %v3597_v48  ;;  %v1215_v19 = vpop.permute.xlu0 %1214 }
 0x4a6   : > { %3223 = vmatpush3.bf16.msra.mxu0 %v1088_v18 }
 0x4a7   : > { %3244 = vmatprep.subr.bf16.mxu0 %v3597_v48 }
 0x4a9   : > { %v1266_v54 = vpop.permute.xlu0 %1265 }
 0x4c6   : > { %v860_v63 = vpop.xlane.xlu1 %859 }
 0x4c7   : > { %3483 = vrcp.f32 %v860_v63 }
 0x4ca   : > { %v1023_v0 = vpop.permute.xlu1 %1022 }
 0x4cb   : > { %3217 = vmatpush3.bf16.msra.mxu1 %v1023_v0 }
 0x4cc   : > { %3232 = vmatprep.subr.bf16.mxu1 %v3597_v48 }
 0x4ce   : > { %v1164_v10 = vpop.permute.xlu1 %1163 }
 0x4d2   : > { %v1268_v14 = vpop.permute.xlu1 %1267 }
 0x4d3   : > { %v1273_v41 = vsel %vm580_vm2, %v1268_v14, 0 }
 0x4d4   : > { %v3484_v3 = vpop.eup %3483 }
 0x4d5   : > { %v876_v6 = vmul.f32 %v3484_v3, %v3468_v40 }
 0x4d6   : > { %v1319_v16 = vpop.permute.xlu1 %1318 }
 0x4d7   : > { %v880_v8 = vpack.c.bf16 %v876_v6, %v875_v5  ;;  %v1324_v22 = vsel %vm580_vm2, %v1319_v16, 0 }
 0x4d9   : > { %3219 = vmatmul.mubr.msk.bf16.vlgmr.msra.gmra.mxu1 %vm788_vm3, %v880_v8 }
 0x4da   : > { %3233 = vmatpush3.bf16.xpose.msra.mxu1 %v1171_v9  ;;  %3234 = vmatprep.mubr.msk.bf16.mxu1 %vm3598_vm1, %v3597_v48  ;;  %v1317_v23 = vpop.permute.xlu1 %1316 }
 0x4db   : > { %3238 = vmatprep.subr.bf16.mxu1 %v3597_v48 }
 0x4e1   : > { %3235 = vmatmul.mubr.msk.bf16.vlgmr.msra.gmra.mxu1 %vm580_vm2, %v1164_v10 }
 0x4e2   : > { %3239 = vmatpush3.bf16.xpose.msra.mxu1 %v1222_v15  ;;  %3240 = vmatprep.mubr.msk.bf16.mxu1 %vm3598_vm1, %v3597_v48 }
 0x4e3   : > { %3250 = vmatprep.subr.bf16.mxu1 %v3597_v48 }
 0x4e9   : > { %3241 = vmatmul.mubr.msk.bf16.vlgmr.msra.gmra.mxu1 %vm580_vm2, %v1215_v19 }
 0x4ea   : > { %3251 = vmatpush3.bf16.xpose.msra.mxu1 %v1324_v22  ;;  %3252 = vmatprep.mubr.msk.bf16.mxu1 %vm3598_vm1, %v3597_v48 }
 0x4eb   : > { %3262 = vmatprep.subr.bf16.mxu1 %v3597_v48 }
 0x4f1   : > { %3253 = vmatmul.mubr.msk.bf16.vlgmr.msra.gmra.mxu1 %vm580_vm2, %v1317_v23 }
 0x4f2   : > { %3264 = vmatprep.mubr.msk.bf16.mxu1 %vm3598_vm1, %v3597_v48 }
 0x55d   : > { %v921_v24 = vpop.f32.mrf.mxu0 }
 0x55f   : > { %v3202_v25 = vpop.f32.mrf.mxu0 }
 0x561   : > { %v924_v26 = vpop.f32.mrf.mxu0 }
 0x562   : > { %v1069_v27 = vpack.c.bf16 %v924_v26, %v921_v24 }
 0x563   : > { %v3203_v30 = vpop.f32.mrf.mxu0 }
 0x564   : > { %v968_v31 = vpop.f32.mrf.mxu1  ;;  %3224 = vmatprep.mubr.msk.bf16.mxu0 %vm580_vm2, %v1069_v27 }
 0x565   : > { %v1015_v32 = vpop.f32.mrf.mxu0 }
 0x566   : > { %v3208_v33 = vpop.f32.mrf.mxu1 }
 0x567   : > { %v3214_v20 = vpop.f32.mrf.mxu0 }
 0x568   : > { %v971_v34 = vpop.f32.mrf.mxu1 }
 0x569   : > { %v1070_v35 = vpack.c.bf16 %v971_v34, %v968_v31  ;;  %v1018_v36 = vpop.f32.mrf.mxu0 }
 0x56a   : > { %v1071_v37 = vpack.c.bf16 %v1018_v36, %v1015_v32  ;;  %v3209_v40 = vpop.f32.mrf.mxu1 }
 0x56b   : > { %v3215_v28 = vpop.f32.mrf.mxu0  ;;  %3225 = vmatmul.mubr.msk.bf16.vlgmr.msra.gmra.mxu0 %vm580_vm2, %v1070_v35 }
 0x56c   : > { %3245 = vmatpush3.bf16.xpose.msra.mxu0 %v1273_v41  ;;  %3228 = vmatprep.mubr.msk.bf16.mxu0 %vm580_vm2, %v1071_v37 }
 0x56d   : > { %3256 = vmatprep.subr.bf16.mxu0 %v3597_v48 }
 0x599   : > { %v1062_v42 = vpop.f32.mrf.mxu1 }
 0x59b   : > { %v3220_v43 = vpop.f32.mrf.mxu1 }
 0x59d   : > { %v1065_v44 = vpop.f32.mrf.mxu1 }
 0x59e   : > { %v1072_v21 = vpack.c.bf16 %v1065_v44, %v1062_v42 }
 0x59f   : > { %v3221_v45 = vpop.f32.mrf.mxu1 }
 0x5a0   : > { %3229 = vmatmul.mubr.msk.bf16.gmra.mxu0 %vm580_vm2, %v1072_v21 }
 0x5a1   : > { %v1207_v47 = vpop.f32.mrf.mxu1  ;;  %3246 = vmatprep.mubr.msk.bf16.mxu0 %vm3598_vm1, %v3597_v48 }
 0x5a2   : > { %v1370_v50 = vadd.f32 %v3029_v46, %v1207_v47 }
 0x5a3   : > { %v3236_v51 = vpop.f32.mrf.mxu1 }
 0x5a4   : > { %v1378_v38 = vsel %vm788_vm3, %v1370_v50, -inf }
 0x5a5   : > { %1379 = vmax.xlane.f32.xlu0 %v1378_v38  ;;  %v1210_v52 = vpop.f32.mrf.mxu1 }
 0x5a6   : > { %v1371_v53 = vadd.f32 %v3030_v29, %v1210_v52 }
 0x5a7   : > { %v3237_v55 = vpop.f32.mrf.mxu1 }
 0x5a8   : > { %3247 = vmatmul.mubr.msk.bf16.vlgmr.msra.gmra.mxu0 %vm580_vm2, %v1266_v54  ;;  %v1381_v56 = vsel %vm788_vm3, %v1371_v53, -inf }
 0x5a9   : > { %1382 = vmax.xlane.f32.xlu1 %v1381_v56  ;;  %v1258_v57 = vpop.f32.mrf.mxu1  ;;  %3258 = vmatprep.mubr.msk.bf16.mxu0 %vm3598_vm1, %v3597_v48 }
 0x5aa   : > { %v1372_v39 = vadd.f32 %v3029_v46, %v1258_v57 }
 0x5ab   : > { %v3242_v58 = vpop.f32.mrf.mxu1 }
 0x5ac   : > { %v1384_v49 = vsel %vm788_vm3, %v1372_v39, -inf }
 0x5ad   : > { %1385 = vmax.xlane.f32.xlu0 %v1384_v49  ;;  %v1261_v59 = vpop.f32.mrf.mxu1 }
 0x5ae   : > { %v1373_v60 = vadd.f32 %v3030_v29, %v1261_v59 }
 0x5af   : > { %v3243_v61 = vpop.f32.mrf.mxu1 }
 0x5b0   : > { %v1387_v62 = vsel %vm788_vm3, %v1373_v60, -inf }
 0x5b1   : > { %1388 = vmax.xlane.f32.xlu0 %v1387_v62  ;;  %v1360_v63 = vpop.f32.mrf.mxu1 }
 0x5b2   : > { %v1376_v20 = vadd.f32 %v3029_v46, %v1360_v63 }
 0x5b3   : > { %v3254_v0 = vpop.f32.mrf.mxu1 }
 0x5b4   : > { %v1396_v28 = vsel %vm788_vm3, %v1376_v20, -inf }
 0x5b5   : > { %v1363_v2 = vpop.f32.mrf.mxu1 }
 0x5b6   : > { %v1377_v40 = vadd.f32 %v3030_v29, %v1363_v2 }
 0x5b7   : > { %v3255_v3 = vpop.f32.mrf.mxu1 }
 0x5b8   : > { %v1399_v21 = vsel %vm788_vm3, %v1377_v40, -inf }
 0x62b   : > { %v3915_v5 = vpop.f32.mrf.mxu0 }
 0x62d   : > { %v3917_v6 = vpop.f32.mrf.mxu0 }
 0x62e   : > { %v1380_v7 = vpop.xlane.xlu0 %1379 }
 0x62f   : > { %v3919_v8 = vpop.f32.mrf.mxu0  ;;  %v1402_v10 = vsub.f32 %v1370_v50, %v1380_v7 }
 0x631   : > { %v3921_v14 = vpop.f32.mrf.mxu0  ;;  %v1410_v16 = vmul.f32 1.442695, %v1402_v10 }
 0x632   : > { %v1383_v12 = vpop.xlane.xlu1 %1382 }
 0x633   : > { %v1403_v15 = vsub.f32 %v1371_v53, %v1383_v12  ;;  %3485 = vpow2.f32 %v1410_v16 }
 0x635   : > { %v1412_v22 = vmul.f32 1.442695, %v1403_v15 }
 0x636   : > { %v1386_v9 = vpop.xlane.xlu0 %1385 }
 0x637   : > { %v1404_v17 = vsub.f32 %v1372_v39, %v1386_v9  ;;  %3487 = vpow2.f32 %v1412_v22 }
 0x639   : > { %v1414_v24 = vmul.f32 1.442695, %v1404_v17 }
 0x63a   : > { %v1389_v18 = vpop.xlane.xlu0 %1388 }
 0x63b   : > { %v1405_v25 = vsub.f32 %v1373_v60, %v1389_v18  ;;  %3489 = vpow2.f32 %v1414_v24 }
 0x63d   : > { %v1416_v30 = vmul.f32 1.442695, %v1405_v25 }
 0x63f   : > { %3491 = vpow2.f32 %v1416_v30 }
 0x640   : > { %v3934_v42 = vpop.eup %3485 }
 0x641   : > { %v1426_v44 = vsel %vm788_vm3, %v3934_v42, 0.0 }
 0x644   : > { %v3936_v43 = vpop.eup %3487 }
 0x645   : > { %v1429_v47 = vsel %vm788_vm3, %v3936_v43, 0.0 }
 0x648   : > { %v3941_v45 = vpop.eup %3489 }
 0x64c   : > { %v3947_v50 = vpop.eup %3491 }
 0x64d   : > { %v1435_v51 = vsel %vm788_vm3, %v3947_v50, 0.0 }
 0x660   : > { %v3923_v19 = vpop.f32.mrf.mxu0 }
 0x662   : > { %v3925_v23 = vpop.f32.mrf.mxu0 }
 0x664   : > { %v3927_v26 = vpop.f32.mrf.mxu0 }
 0x666   : > { %v3929_v27 = vpop.f32.mrf.mxu0 }
 0x668   : > { %v1309_v31 = vpop.f32.mrf.mxu0 }
 0x669   : > { %v1374_v32 = vadd.f32 %v3029_v46, %v1309_v31  ;;  %v1432_v46 = vsel %vm788_vm3, %v3941_v45, 0.0 }
 0x66a   : > { %v3248_v33 = vpop.f32.mrf.mxu0 }
 0x66b   : > { %v1390_v34 = vsel %vm788_vm3, %v1374_v32, -inf }
 0x66c   : > { %v1312_v35 = vpop.f32.mrf.mxu0  ;;  %1391 = vmax.xlane.f32.xlu0 %v1390_v34 }
 0x66d   : > { %v1375_v36 = vadd.f32 %v3030_v29, %v1312_v35 }
 0x66e   : > { %v3249_v37 = vpop.f32.mrf.mxu0 }
 0x66f   : > { %v1393_v41 = vsel %vm788_vm3, %v1375_v36, -inf }
 0x670   : > { %1394 = vmax.xlane.f32.xlu1 %v1393_v41  ;;  %1397 = vmax.xlane.f32.xlu0 %v1396_v28 }
 0x674   : > { %1427 = vadd.xlane.f32.xlu0 %v1426_v44  ;;  %1400 = vmax.xlane.f32.xlu1 %v1399_v21 }
 0x678   : > { %1433 = vadd.xlane.f32.xlu0 %v1432_v46  ;;  %1430 = vadd.xlane.f32.xlu1 %v1429_v47 }
 0x67c   : > { %1436 = vadd.xlane.f32.xlu1 %v1435_v51 }
 0x6f5   : > { %v1392_v29 = vpop.xlane.xlu0 %1391 }
 0x6f6   : > { %v1406_v38 = vsub.f32 %v1374_v32, %v1392_v29 }
 0x6f8   : > { %v1418_v56 = vmul.f32 1.442695, %v1406_v38 }
 0x6f9   : > { %v1395_v52 = vpop.xlane.xlu1 %1394  ;;  %v1398_v53 = vpop.xlane.xlu0 %1397 }
 0x6fa   : > { %v1408_v54 = vsub.f32 %v1376_v20, %v1398_v53  ;;  %v1407_v0 = vsub.f32 %v1375_v36, %v1395_v52 }
 0x6fc   : > { %v1422_v55 = vmul.f32 1.442695, %v1408_v54  ;;  %v1420_v2 = vmul.f32 1.442695, %v1407_v0 }
 0x6fd   : > { %v1401_v57 = vpop.xlane.xlu1 %1400  ;;  %v1428_v10 = vpop.xlane.xlu0 %1427 }
 0x6fe   : > { %v1409_v39 = vsub.f32 %v1377_v40, %v1401_v57  ;;  %3493 = vpow2.f32 %v1422_v55  ;;  %v3035_v57 = vld [vmem:[%s4330_s5 + $0x4] sm:$0xf] }
 0x6ff   : > { %3495 = vpow2.f32 %v1418_v56 }
 0x700   : > { %v1424_v58 = vmul.f32 1.442695, %v1409_v39  ;;  %v1677_v39 = vsel %vm1086_vm4, %v3035_v57, 0 }
 0x701   : > { %v1431_v9 = vpop.xlane.xlu1 %1430  ;;  %v1434_v15 = vpop.xlane.xlu0 %1433 }
 0x702   : > { %3497 = vpow2.f32 %v1424_v58 }
 0x703   : > { %3499 = vpow2.f32 %v1420_v2 }
 0x705   : > { %v1437_v12 = vpop.xlane.xlu1 %1436 }
 0x706   : > { %3501 = vrcp.f32 %v1437_v12 }
 0x707   : > { %3503 = vrcp.f32 %v1431_v9 }
 0x708   : > { %3505 = vrcp.f32 %v1434_v15 }
 0x709   : > { %3507 = vrcp.f32 %v1428_v10 }
 0x70b   : > { %v3951_v49 = vpop.eup %3493 }
 0x70c   : > { %v1444_v59 = vsel %vm788_vm3, %v3951_v49, 0.0  ;;  %v3955_v60 = vpop.eup %3495 }
 0x70d   : > { %1445 = vadd.xlane.f32.xlu0 %v1444_v59  ;;  %v1438_v63 = vsel %vm788_vm3, %v3955_v60, 0.0 }
 0x70f   : > { %v3957_v61 = vpop.eup %3497 }
 0x710   : > { %v1447_v62 = vsel %vm788_vm3, %v3957_v61, 0.0  ;;  %v3970_v3 = vpop.eup %3499 }
 0x711   : > { %1448 = vadd.xlane.f32.xlu1 %v1447_v62  ;;  %1439 = vadd.xlane.f32.xlu0 %v1438_v63  ;;  %v1441_v7 = vsel %vm788_vm3, %v3970_v3, 0.0 }
 0x713   : > { %v3502_v17 = vpop.eup %3501 }
 0x714   : > { %v3504_v18 = vpop.eup %3503  ;;  %v1461_v31 = vmul.f32 %v3502_v17, %v3947_v50 }
 0x715   : > { %v3506_v24 = vpop.eup %3505  ;;  %v1459_v32 = vmul.f32 %v3504_v18, %v3936_v43 }
 0x716   : > { %v3508_v30 = vpop.eup %3507  ;;  %v1460_v20 = vmul.f32 %v3506_v24, %v3941_v45  ;;  %v4028_v24 = vld [vmem:[%s4332_s7 + $0x20] sm:$0xff] }
 0x717   : > { %v1458_v35 = vmul.f32 %v3508_v30, %v3934_v42 }
 0x718   : > { %v1467_v36 = vpack.c.bf16 %v1461_v31, %v1460_v20 }
 0x719   : > { %v1466_v37 = vpack.c.bf16 %v1459_v32, %v1458_v35  ;;  %v4036_v32 = vld [vmem:[%s4332_s7 + $0x28] sm:$0xff] }
 0x722   : > { %1517 = vrot.lane.b32.xlu1 %v3762_v1, %s3603_s18 }
 0x726   : > { %1564 = vrot.lane.b32.xlu1 %v3768_v11, %s3603_s18 }
 0x727   : > { %1470 = vrot.lane.b32.xlu0 %v3764_v4, %s3603_s18 }
 0x72b   : > { %1754 = vrot.lane.b32.xlu0 %v3764_v4, %s3604_s19 }
 0x72f   : > { %1805 = vrot.lane.b32.xlu0 %v3762_v1, %s3604_s19 }
 0x733   : > { %1803 = vrot.lane.b32.xlu0 %v3762_v1, %s3605_s20 }
 0x737   : > { %1854 = vrot.lane.b32.xlu0 %v3768_v11, %s3605_s20 }
 0x74a   : > { %1442 = vadd.xlane.f32.xlu1 %v1441_v7 }
 0x75b   : > { %1611 = vrot.lane.b32.xlu1 %v3771_v13, %s3603_s18 }
 0x75f   : > { %1752 = vrot.lane.b32.xlu1 %v3764_v4, %s3605_s20 }
 0x763   : > { %1856 = vrot.lane.b32.xlu1 %v3768_v11, %s3604_s19 }
 0x767   : > { %1907 = vrot.lane.b32.xlu1 %v3771_v13, %s3604_s19  ;;  %s3609_s19 = smov 40  }
 0x76b   : > { %1905 = vrot.lane.b32.xlu1 %v3771_v13, %s3605_s20 }
 0x796   : > { %v1446_v16 = vpop.xlane.xlu0 %1445 }
 0x79a   : > { %v1449_v22 = vpop.xlane.xlu1 %1448  ;;  %v1440_v25 = vpop.xlane.xlu0 %1439 }
 0x79b   : > { %3509 = vrcp.f32 %v1449_v22 }
 0x79c   : > { %3511 = vrcp.f32 %v1446_v16 }
 0x79d   : > { %3513 = vrcp.f32 %v1440_v25 }
 0x79e   : > { %v1518_v33 = vpop.permute.xlu1 %1517  ;;  %v1471_v34 = vpop.permute.xlu0 %1470 }
 0x79f   : > { %3263 = vmatpush3.bf16.msra.mxu1 %v1518_v33  ;;  %3257 = vmatpush3.bf16.msra.mxu0 %v1471_v34 }
 0x7a0   : > { %3274 = vmatprep.subr.bf16.mxu1 %v3597_v48  ;;  %3268 = vmatprep.subr.bf16.mxu0 %v3597_v48 }
 0x7a2   : > { %3265 = vmatmul.mubr.msk.bf16.vlgmr.msra.gmra.mxu1 %vm788_vm3, %v1467_v36  ;;  %v1565_v40 = vpop.permute.xlu1 %1564  ;;  %3259 = vmatmul.mubr.msk.bf16.vlgmr.msra.gmra.mxu0 %vm788_vm3, %v1466_v37  ;;  %v1755_v45 = vpop.permute.xlu0 %1754 }
 0x7a3   : > { %3276 = vmatprep.mubr.msk.bf16.mxu1 %vm3598_vm1, %v3597_v48  ;;  %3269 = vmatpush3.bf16.msra.mxu0 %v1565_v40  ;;  %v1760_v47 = vsel %vm580_vm2, %v1755_v45, 0 }
 0x7a4   : > { %3270 = vmatprep.mubr.msk.bf16.mxu0 %vm3598_vm1, %v3597_v48  ;;  %3411 = vmatprep.subr.msk.bf16.mxu0 %vm1086_vm4, %v3035_v57  ;;  %v3581_v57 = vld [vmem:[%s3671_s11 + $0x10] sm:$0xff] }
 0x7a6   : > { %v1806_v29 = vpop.permute.xlu0 %1805 }
 0x7a7   : > { %v1811_v55 = vsel %vm580_vm2, %v1806_v29, 0 }
 0x7a8   : > { %v3510_v41 = vpop.eup %3509 }
 0x7a9   : > { %v3512_v42 = vpop.eup %3511  ;;  %v1465_v43 = vmul.f32 %v3510_v41, %v3957_v61 }
 0x7aa   : > { %v1464_v21 = vmul.f32 %v3512_v42, %v3951_v49  ;;  %v3514_v51 = vpop.eup %3513  ;;  %v1804_v49 = vpop.permute.xlu0 %1803 }
 0x7ab   : > { %v1462_v53 = vmul.f32 %v3514_v51, %v3955_v60 }
 0x7ac   : > { %v1469_v46 = vpack.c.bf16 %v1465_v43, %v1464_v21 }
 0x7d3   : > { %v1443_v28 = vpop.xlane.xlu1 %1442 }
 0x7d4   : > { %3515 = vrcp.f32 %v1443_v28 }
 0x7d7   : > { %v1612_v44 = vpop.permute.xlu1 %1611 }
 0x7d8   : > { %3275 = vmatpush3.bf16.msra.mxu1 %v1612_v44 }
 0x7d9   : > { %3290 = vmatprep.subr.bf16.mxu1 %v3597_v48 }
 0x7db   : > { %3277 = vmatmul.mubr.msk.bf16.vlgmr.msra.gmra.mxu1 %vm788_vm3, %v1469_v46  ;;  %v1753_v50 = vpop.permute.xlu1 %1752 }
 0x7dc   : > { %3291 = vmatpush3.bf16.xpose.msra.mxu1 %v1760_v47  ;;  %3292 = vmatprep.mubr.msk.bf16.mxu1 %vm3598_vm1, %v3597_v48 }
 0x7dd   : > { %3296 = vmatprep.subr.bf16.mxu1 %v3597_v48 }
 0x7df   : > { %v1857_v52 = vpop.permute.xlu1 %1856 }
 0x7e0   : > { %v1862_v15 = vsel %vm580_vm2, %v1857_v52, 0  ;;  %v1855_v52 = vpop.permute.xlu0 %1854 }
 0x7e1   : > { %v3516_v38 = vpop.eup %3515 }
 0x7e2   : > { %v1463_v54 = vmul.f32 %v3516_v38, %v3970_v3 }
 0x7e3   : > { %3293 = vmatmul.mubr.msk.bf16.vlgmr.msra.gmra.mxu1 %vm580_vm2, %v1753_v50  ;;  %v1908_v58 = vpop.permute.xlu1 %1907 }
 0x7e4   : > { %3297 = vmatpush3.bf16.xpose.msra.mxu1 %v1811_v55  ;;  %v1468_v56 = vpack.c.bf16 %v1463_v54, %v1462_v53  ;;  %3298 = vmatprep.mubr.msk.bf16.mxu1 %vm3598_vm1, %v3597_v48  ;;  %v1913_v59 = vsel %vm580_vm2, %v1908_v58, 0  ;;  %v3582_v58 = vld [vmem:[%s3671_s11] sm:$0xff] }
 0x7e5   : > { %3308 = vmatprep.subr.bf16.mxu1 %v3597_v48 }
 0x7e6   : > { %3271 = vmatmul.mubr.msk.bf16.vlgmr.msra.gmra.mxu0 %vm788_vm3, %v1468_v56  ;;  %v3012_v56 = vld [vmem:[%s4331_s6] ss:$0 sm:$0xff] }
 0x7e7   : > { %3281 = vmatpush3.bf16.msra.mxu0 %v1677_v39  ;;  %v1906_v60 = vpop.permute.xlu1 %1905  ;;  %v567_v39 = vadd.f32 %v3581_v57, %v3012_v56 }
 0x7e8   : > { %3302 = vmatprep.subr.bf16.mxu0 %v3597_v48 }
 0x7eb   : > { %3299 = vmatmul.mubr.msk.bf16.vlgmr.msra.gmra.mxu1 %vm580_vm2, %v1804_v49  ;;  %v565_v49 = vadd.f32 %v3582_v58, %v3012_v56 }
 0x7ec   : > { %3309 = vmatpush3.bf16.xpose.msra.mxu1 %v1913_v59  ;;  %3310 = vmatprep.mubr.msk.bf16.mxu1 %vm3598_vm1, %v3597_v48  ;;  %v1157_v59 = vadd.f32 %v3915_v5, %v567_v39 }
 0x7ed   : > { %3320 = vmatprep.subr.bf16.mxu1 %v3597_v48 }
 0x7f3   : > { %3311 = vmatmul.mubr.msk.bf16.vlgmr.msra.gmra.mxu1 %vm580_vm2, %v1906_v60  ;;  %v3583_v60 = vld [vmem:[%s3671_s11 + $0x18] sm:$0xff] }
 0x7f4   : > { %3322 = vmatprep.mubr.msk.bf16.mxu1 %vm3598_vm1, %v3597_v48 }
 0x862   : > { %v1557_v61 = vpop.f32.mrf.mxu1  ;;  %v1510_v62 = vpop.f32.mrf.mxu0 }
 0x864   : > { %v3266_v63 = vpop.f32.mrf.mxu1  ;;  %v3260_v0 = vpop.f32.mrf.mxu0 }
 0x865   : > { %v1155_v63 = vadd.f32 %v3917_v6, %v565_v49  ;;  %v3584_v0 = vld [vmem:[%s3671_s11 + $0x8] sm:$0xff] }
 0x866   : > { %v1560_v2 = vpop.f32.mrf.mxu1  ;;  %v1513_v3 = vpop.f32.mrf.mxu0 }
 0x867   : > { %v1659_v7 = vpack.c.bf16 %v1560_v2, %v1557_v61  ;;  %v1658_v9 = vpack.c.bf16 %v1513_v3, %v1510_v62  ;;  %v568_v61 = vadd.f32 %v3583_v60, %v3012_v56  ;;  %v566_v2 = vadd.f32 %v3584_v0, %v3012_v56 }
 0x868   : > { %v3267_v10 = vpop.f32.mrf.mxu1  ;;  %v3261_v12 = vpop.f32.mrf.mxu0 }
 0x869   : > { %3282 = vmatprep.mubr.msk.bf16.mxu0 %vm580_vm2, %v1658_v9  ;;  %v1158_v9 = vadd.f32 %v3919_v8, %v568_v61  ;;  %v1156_v5 = vadd.f32 %v3921_v14, %v566_v2 }
 0x86a   : > { %3283 = vmatmul.mubr.msk.bf16.vlgmr.msra.gmra.mxu0 %vm580_vm2, %v1659_v7 }
 0x86b   : > { %3303 = vmatpush3.bf16.xpose.msra.mxu0 %v1862_v15 }
 0x86c   : > { %3314 = vmatprep.subr.bf16.mxu0 %v3597_v48 }
 0x89b   : > { %v1651_v16 = vpop.f32.mrf.mxu1 }
 0x89d   : > { %v3278_v17 = vpop.f32.mrf.mxu1 }
 0x89f   : > { %v1654_v18 = vpop.f32.mrf.mxu1 }
 0x8a0   : > { %v1661_v43 = vpack.c.bf16 %v1654_v18, %v1651_v16 }
 0x8a1   : > { %v3279_v22 = vpop.f32.mrf.mxu1 }
 0x8a2   : > { %v3585_v22 = vld [vmem:[%s3671_s11 + $0x30] sm:$0xff] }
 0x8a3   : > { %v1796_v25 = vpop.f32.mrf.mxu1 }
 0x8a4   : > { %v4031_v30 = vadd.f32 %v4028_v24, %v1796_v25  ;;  %v571_v25 = vadd.f32 %v3585_v22, %v3012_v56 }
 0x8a5   : > { %v3294_v31 = vpop.f32.mrf.mxu1 }
 0x8a6   : > { %v1604_v33 = vpop.f32.mrf.mxu0  ;;  %v1967_v20 = vsel %vm788_vm3, %v4031_v30, -inf  ;;  %v1161_v14 = vadd.f32 %v3923_v19, %v571_v25 }
 0x8a7   : > { %1968 = vmax.xlane.f32.xlu0 %v1967_v20  ;;  %v1799_v34 = vpop.f32.mrf.mxu1  ;;  %v3586_v20 = vld [vmem:[%s3671_s11 + $0x20] sm:$0xff] }
 0x8a8   : > { %v4041_v35 = vadd.f32 %v4036_v32, %v1799_v34  ;;  %v3272_v36 = vpop.f32.mrf.mxu0  ;;  %v569_v8 = vadd.f32 %v3586_v20, %v3012_v56  ;;  %v3587_v34 = vld [vmem:[%s3671_s11 + $0x38] sm:$0xff] }
 0x8a9   : > { %v3295_v37 = vpop.f32.mrf.mxu1  ;;  %v572_v36 = vadd.f32 %v3587_v34, %v3012_v56 }
 0x8aa   : > { %v1607_v40 = vpop.f32.mrf.mxu0  ;;  %v1970_v41 = vsel %vm788_vm3, %v4041_v35, -inf }
 0x8ab   : > { %v1660_v28 = vpack.c.bf16 %v1607_v40, %v1604_v33  ;;  %1971 = vmax.xlane.f32.xlu1 %v1970_v41  ;;  %v1847_v42 = vpop.f32.mrf.mxu1 }
 0x8ac   : > { %v4046_v44 = vadd.f32 %v4028_v24, %v1847_v42  ;;  %v3273_v21 = vpop.f32.mrf.mxu0 }
 0x8ad   : > { %3286 = vmatprep.mubr.msk.bf16.mxu0 %vm580_vm2, %v1660_v28  ;;  %v3300_v45 = vpop.f32.mrf.mxu1  ;;  %v3588_v21 = vld [vmem:[%s3671_s11 + $0x28] sm:$0xff]  ;;  %s3606_s11 = smov 48  }
 0x8ae   : > { %3287 = vmatmul.mubr.msk.bf16.gmra.mxu0 %vm580_vm2, %v1661_v43  ;;  %v1973_v46 = vsel %vm788_vm3, %v4046_v44, -inf  ;;  %v1159_v43 = vadd.f32 %v3925_v23, %v569_v8  ;;  %v570_v45 = vadd.f32 %v3588_v21, %v3012_v56 }
 0x8af   : > { %1974 = vmax.xlane.f32.xlu0 %v1973_v46  ;;  %v1850_v47 = vpop.f32.mrf.mxu1  ;;  %3304 = vmatprep.mubr.msk.bf16.mxu0 %vm3598_vm1, %v3597_v48 }
 0x8b0   : > { %v4055_v50 = vadd.f32 %v4036_v32, %v1850_v47 }
 0x8b1   : > { %v3301_v51 = vpop.f32.mrf.mxu1 }
 0x8b2   : > { %v1976_v29 = vsel %vm788_vm3, %v4055_v50, -inf }
 0x8b3   : > { %1977 = vmax.xlane.f32.xlu0 %v1976_v29  ;;  %v4059_v38 = vpop.f32.mrf.mxu1 }
 0x8b5   : > { %v3312_v53 = vpop.f32.mrf.mxu1 }
 0x8b6   : > { %3305 = vmatmul.mubr.msk.bf16.vlgmr.msra.gmra.mxu0 %vm580_vm2, %v1855_v52 }
 0x8b7   : > { %v4062_v54 = vpop.f32.mrf.mxu1  ;;  %3316 = vmatprep.mubr.msk.bf16.mxu0 %vm3598_vm1, %v3597_v48 }
 0x8b8   : > { %v1966_v60 = vadd.f32 %v4036_v32, %v4062_v54 }
 0x8b9   : > { %v3313_v55 = vpop.f32.mrf.mxu1 }
 0x8ba   : > { %v1988_v0 = vsel %vm788_vm3, %v1966_v60, -inf }
 0x92a   : > { %v3284_v62 = vpop.f32.mrf.mxu0 }
 0x92b   : > { %v4075_v3 = vadd.f32 %v3284_v62, %v1157_v59 }
 0x92c   : > { %v1713_v7 = vpop.f32.mrf.mxu0 }
 0x92d   : > { %v4078_v10 = vadd.f32 %v1713_v7, %v1155_v63 }
 0x92e   : > { %v3285_v12 = vpop.f32.mrf.mxu0 }
 0x92f   : > { %v4081_v15 = vadd.f32 %v3285_v12, %v1158_v9 }
 0x930   : > { %v1716_v16 = vpop.f32.mrf.mxu0  ;;  %v1969_v6 = vpop.xlane.xlu0 %1968 }
 0x931   : > { %v4083_v17 = vadd.f32 %v1716_v16, %v1156_v5  ;;  %v1991_v31 = vsub.f32 %v4031_v30, %v1969_v6  ;;  %v1162_v30 = vadd.f32 %v3927_v26, %v572_v36 }
 0x933   : > { %v1999_v40 = vmul.f32 1.442695, %v1991_v31 }
 0x934   : > { %v1972_v33 = vpop.xlane.xlu1 %1971 }
 0x935   : > { %v1992_v37 = vsub.f32 %v4041_v35, %v1972_v33  ;;  %3517 = vpow2.f32 %v1999_v40 }
 0x937   : > { %v2001_v47 = vmul.f32 1.442695, %v1992_v37 }
 0x938   : > { %v1975_v18 = vpop.xlane.xlu0 %1974 }
 0x939   : > { %v1993_v41 = vsub.f32 %v4046_v44, %v1975_v18  ;;  %v1160_v44 = vadd.f32 %v3929_v27, %v570_v45  ;;  %3519 = vpow2.f32 %v2001_v47 }
 0x93b   : > { %v2003_v29 = vmul.f32 1.442695, %v1993_v41 }
 0x93c   : > { %v1978_v28 = vpop.xlane.xlu0 %1977 }
 0x93d   : > { %v1994_v35 = vsub.f32 %v4055_v50, %v1978_v28  ;;  %3521 = vpow2.f32 %v2003_v29  ;;  %v1965_v50 = vadd.f32 %v4028_v24, %v4059_v38 }
 0x93f   : > { %v2005_v55 = vmul.f32 1.442695, %v1994_v35  ;;  %v1985_v62 = vsel %vm788_vm3, %v1965_v50, -inf }
 0x941   : > { %3523 = vpow2.f32 %v2005_v55 }
 0x942   : > { %v4114_v63 = vpop.eup %3517 }
 0x943   : > { %v2015_v38 = vsel %vm788_vm3, %v4114_v63, 0.0 }
 0x96e   : > { %v3288_v42 = vpop.f32.mrf.mxu0 }
 0x96f   : > { %v4094_v46 = vadd.f32 %v3288_v42, %v1161_v14 }
 0x970   : > { %v1729_v51 = vpop.f32.mrf.mxu0 }
 0x971   : > { %v4098_v19 = vadd.f32 %v1729_v51, %v1159_v43 }
 0x972   : > { %v3289_v52 = vpop.f32.mrf.mxu0 }
 0x973   : > { %v4101_v53 = vadd.f32 %v3289_v52, %v1162_v30 }
 0x974   : > { %v1732_v23 = vpop.f32.mrf.mxu0 }
 0x975   : > { %v4103_v56 = vadd.f32 %v1732_v23, %v1160_v44 }
 0x976   : > { %v1898_v26 = vpop.f32.mrf.mxu0 }
 0x977   : > { %v1963_v57 = vadd.f32 %v4028_v24, %v1898_v26  ;;  %v4116_v24 = vpop.eup %3519 }
 0x978   : > { %v3306_v39 = vpop.f32.mrf.mxu0  ;;  %v4121_v2 = vpop.eup %3521  ;;  %v2018_v54 = vsel %vm788_vm3, %v4116_v24, 0.0 }
 0x979   : > { %v1979_v58 = vsel %vm788_vm3, %v1963_v57, -inf  ;;  %v4127_v7 = vpop.eup %3523 }
 0x97a   : > { %v1901_v49 = vpop.f32.mrf.mxu0  ;;  %1980 = vmax.xlane.f32.xlu0 %v1979_v58  ;;  %v2024_v9 = vsel %vm788_vm3, %v4127_v7, 0.0 }
 0x97b   : > { %v1964_v27 = vadd.f32 %v4036_v32, %v1901_v49  ;;  %v2021_v32 = vsel %vm788_vm3, %v4121_v2, 0.0 }
 0x97c   : > { %v3307_v59 = vpop.f32.mrf.mxu0 }
 0x97d   : > { %v1982_v61 = vsel %vm788_vm3, %v1964_v27, -inf }
 0x97e   : > { %1983 = vmax.xlane.f32.xlu1 %v1982_v61  ;;  %1986 = vmax.xlane.f32.xlu0 %v1985_v62 }
 0x982   : > { %2016 = vadd.xlane.f32.xlu0 %v2015_v38  ;;  %1989 = vmax.xlane.f32.xlu1 %v1988_v0 }
 0x986   : > { %2022 = vadd.xlane.f32.xlu0 %v2021_v32  ;;  %2019 = vadd.xlane.f32.xlu1 %v2018_v54 }
 0x98a   : > { %2025 = vadd.xlane.f32.xlu1 %v2024_v9 }
 0xa03   : > { %v1981_v12 = vpop.xlane.xlu0 %1980 }
 0xa04   : > { %v1995_v5 = vsub.f32 %v1963_v57, %v1981_v12 }
 0xa06   : > { %v2007_v25 = vmul.f32 1.442695, %v1995_v5 }
 0xa07   : > { %v1984_v16 = vpop.xlane.xlu1 %1983  ;;  %v1987_v6 = vpop.xlane.xlu0 %1986 }
 0xa08   : > { %v1997_v18 = vsub.f32 %v1965_v50, %v1987_v6  ;;  %v1996_v41 = vsub.f32 %v1964_v27, %v1984_v16 }
 0xa0a   : > { %v2011_v22 = vmul.f32 1.442695, %v1997_v18  ;;  %v2009_v28 = vmul.f32 1.442695, %v1996_v41 }
 0xa0b   : > { %v1990_v31 = vpop.xlane.xlu1 %1989  ;;  %v2017_v45 = vpop.xlane.xlu0 %2016 }
 0xa0c   : > { %v1998_v33 = vsub.f32 %v1966_v60, %v1990_v31  ;;  %3525 = vpow2.f32 %v2011_v22  ;;  %v3050_v31 = vld [vmem:[%s4330_s5 + $0x8] sm:$0xf] }
 0xa0d   : > { %3527 = vpow2.f32 %v2007_v25 }
 0xa0e   : > { %v2013_v20 = vmul.f32 1.442695, %v1998_v33  ;;  %v2266_v33 = vsel %vm1086_vm4, %v3050_v31, 0 }
 0xa0f   : > { %v2020_v21 = vpop.xlane.xlu1 %2019  ;;  %v2023_v47 = vpop.xlane.xlu0 %2022 }
 0xa10   : > { %3529 = vpow2.f32 %v2013_v20 }
 0xa11   : > { %3531 = vpow2.f32 %v2009_v28 }
 0xa13   : > { %v2026_v30 = vpop.xlane.xlu1 %2025 }
 0xa14   : > { %3533 = vrcp.f32 %v2026_v30 }
 0xa15   : > { %3535 = vrcp.f32 %v2020_v21 }
 0xa16   : > { %3537 = vrcp.f32 %v2023_v47 }
 0xa17   : > { %3539 = vrcp.f32 %v2017_v45 }
 0xa19   : > { %v4131_v8 = vpop.eup %3525 }
 0xa1a   : > { %v2033_v34 = vsel %vm788_vm3, %v4131_v8, 0.0  ;;  %v4135_v36 = vpop.eup %3527 }
 0xa1b   : > { %2034 = vadd.xlane.f32.xlu0 %v2033_v34  ;;  %v2027_v40 = vsel %vm788_vm3, %v4135_v36, 0.0 }
 0xa1d   : > { %v4137_v37 = vpop.eup %3529 }
 0xa1e   : > { %v2036_v14 = vsel %vm788_vm3, %v4137_v37, 0.0  ;;  %v4150_v42 = vpop.eup %3531 }
 0xa1f   : > { %2037 = vadd.xlane.f32.xlu1 %v2036_v14  ;;  %2028 = vadd.xlane.f32.xlu0 %v2027_v40  ;;  %v2030_v43 = vsel %vm788_vm3, %v4150_v42, 0.0 }
 0xa21   : > { %v3534_v29 = vpop.eup %3533 }
 0xa22   : > { %v3536_v35 = vpop.eup %3535  ;;  %v2050_v26 = vmul.f32 %v3534_v29, %v4127_v7 }
 0xa23   : > { %v3538_v44 = vpop.eup %3537  ;;  %v2048_v57 = vmul.f32 %v3536_v35, %v4116_v24 }
 0xa24   : > { %v3540_v55 = vpop.eup %3539  ;;  %v2049_v50 = vmul.f32 %v3538_v44, %v4121_v2  ;;  %v4208_v44 = vld [vmem:[%s4332_s7 + $0x30] sm:$0xff] }
 0xa25   : > { %v2047_v49 = vmul.f32 %v3540_v55, %v4114_v63 }
 0xa26   : > { %v2056_v27 = vpack.c.bf16 %v2050_v26, %v2049_v50 }
 0xa27   : > { %v2055_v59 = vpack.c.bf16 %v2048_v57, %v2047_v49  ;;  %v4214_v57 = vld [vmem:[%s4332_s7 + $0x38] sm:$0xff] }
 0xa30   : > { %2106 = vrot.lane.b32.xlu1 %v3762_v1, %s3606_s11 }
 0xa34   : > { %2153 = vrot.lane.b32.xlu1 %v3768_v11, %s3606_s11 }
 0xa35   : > { %2059 = vrot.lane.b32.xlu0 %v3764_v4, %s3606_s11 }
 0xa39   : > { %2343 = vrot.lane.b32.xlu0 %v3764_v4, %s3607_s10 }
 0xa3d   : > { %2394 = vrot.lane.b32.xlu0 %v3762_v1, %s3607_s10 }
 0xa41   : > { %2392 = vrot.lane.b32.xlu0 %v3762_v1, %s3608_s12 }
 0xa45   : > { %2443 = vrot.lane.b32.xlu0 %v3768_v11, %s3608_s12 }
 0xa58   : > { %2031 = vadd.xlane.f32.xlu1 %v2030_v43 }
 0xa69   : > { %2200 = vrot.lane.b32.xlu1 %v3771_v13, %s3606_s11 }
 0xa6d   : > { %2341 = vrot.lane.b32.xlu1 %v3764_v4, %s3608_s12 }
 0xa71   : > { %2445 = vrot.lane.b32.xlu1 %v3768_v11, %s3607_s10 }
 0xa75   : > { %2496 = vrot.lane.b32.xlu1 %v3771_v13, %s3607_s10 }
 0xa79   : > { %2494 = vrot.lane.b32.xlu1 %v3771_v13, %s3608_s12 }
 0xaa4   : > { %v2035_v51 = vpop.xlane.xlu0 %2034 }
 0xaa8   : > { %v2038_v52 = vpop.xlane.xlu1 %2037  ;;  %v2029_v23 = vpop.xlane.xlu0 %2028 }
 0xaa9   : > { %3541 = vrcp.f32 %v2038_v52 }
 0xaaa   : > { %3543 = vrcp.f32 %v2035_v51 }
 0xaab   : > { %3545 = vrcp.f32 %v2029_v23 }
 0xaac   : > { %v2107_v39 = vpop.permute.xlu1 %2106  ;;  %v2060_v58 = vpop.permute.xlu0 %2059 }
 0xaad   : > { %3321 = vmatpush3.bf16.msra.mxu1 %v2107_v39  ;;  %3315 = vmatpush3.bf16.msra.mxu0 %v2060_v58 }
 0xaae   : > { %3332 = vmatprep.subr.bf16.mxu1 %v3597_v48  ;;  %3326 = vmatprep.subr.bf16.mxu0 %v3597_v48 }
 0xab0   : > { %3323 = vmatmul.mubr.msk.bf16.vlgmr.msra.gmra.mxu1 %vm788_vm3, %v2056_v27  ;;  %v2154_v60 = vpop.permute.xlu1 %2153  ;;  %3317 = vmatmul.mubr.msk.bf16.vlgmr.msra.gmra.mxu0 %vm788_vm3, %v2055_v59  ;;  %v2344_v2 = vpop.permute.xlu0 %2343 }
 0xab1   : > { %3334 = vmatprep.mubr.msk.bf16.mxu1 %vm3598_vm1, %v3597_v48  ;;  %3327 = vmatpush3.bf16.msra.mxu0 %v2154_v60  ;;  %v2349_v54 = vsel %vm580_vm2, %v2344_v2, 0 }
 0xab2   : > { %3328 = vmatprep.mubr.msk.bf16.mxu0 %vm3598_vm1, %v3597_v48  ;;  %3412 = vmatprep.subr.msk.bf16.mxu0 %vm1086_vm4, %v3050_v31 }
 0xab4   : > { %v2395_v12 = vpop.permute.xlu0 %2394 }
 0xab5   : > { %v2400_v22 = vsel %vm580_vm2, %v2395_v12, 0 }
 0xab6   : > { %v3542_v61 = vpop.eup %3541 }
 0xab7   : > { %v3544_v63 = vpop.eup %3543  ;;  %v2054_v24 = vmul.f32 %v3542_v61, %v4137_v37 }
 0xab8   : > { %v2053_v0 = vmul.f32 %v3544_v63, %v4131_v8  ;;  %v3546_v9 = vpop.eup %3545  ;;  %v2393_v8 = vpop.permute.xlu0 %2392 }
 0xab9   : > { %v2051_v6 = vmul.f32 %v3546_v9, %v4135_v36 }
 0xaba   : > { %v2058_v32 = vpack.c.bf16 %v2054_v24, %v2053_v0 }
 0xae1   : > { %v2032_v62 = vpop.xlane.xlu1 %2031 }
 0xae2   : > { %3547 = vrcp.f32 %v2032_v62 }
 0xae5   : > { %v2201_v38 = vpop.permute.xlu1 %2200 }
 0xae6   : > { %3333 = vmatpush3.bf16.msra.mxu1 %v2201_v38 }
 0xae7   : > { %3348 = vmatprep.subr.bf16.mxu1 %v3597_v48 }
 0xae9   : > { %3335 = vmatmul.mubr.msk.bf16.vlgmr.msra.gmra.mxu1 %vm788_vm3, %v2058_v32  ;;  %v2342_v7 = vpop.permute.xlu1 %2341 }
 0xaea   : > { %3349 = vmatpush3.bf16.xpose.msra.mxu1 %v2349_v54  ;;  %3350 = vmatprep.mubr.msk.bf16.mxu1 %vm3598_vm1, %v3597_v48 }
 0xaeb   : > { %3354 = vmatprep.subr.bf16.mxu1 %v3597_v48 }
 0xaed   : > { %v2446_v16 = vpop.permute.xlu1 %2445 }
 0xaee   : > { %v2451_v47 = vsel %vm580_vm2, %v2446_v16, 0  ;;  %v2444_v16 = vpop.permute.xlu0 %2443 }
 0xaef   : > { %v3548_v5 = vpop.eup %3547 }
 0xaf0   : > { %v2052_v18 = vmul.f32 %v3548_v5, %v4150_v42 }
 0xaf1   : > { %3351 = vmatmul.mubr.msk.bf16.vlgmr.msra.gmra.mxu1 %vm580_vm2, %v2342_v7  ;;  %v2497_v20 = vpop.permute.xlu1 %2496 }
 0xaf2   : > { %3355 = vmatpush3.bf16.xpose.msra.mxu1 %v2400_v22  ;;  %v2057_v25 = vpack.c.bf16 %v2052_v18, %v2051_v6  ;;  %3356 = vmatprep.mubr.msk.bf16.mxu1 %vm3598_vm1, %v3597_v48  ;;  %v2502_v34 = vsel %vm580_vm2, %v2497_v20, 0 }
 0xaf3   : > { %3366 = vmatprep.subr.bf16.mxu1 %v3597_v48 }
 0xaf4   : > { %3329 = vmatmul.mubr.msk.bf16.vlgmr.msra.gmra.mxu0 %vm788_vm3, %v2057_v25 }
 0xaf5   : > { %3339 = vmatpush3.bf16.msra.mxu0 %v2266_v33  ;;  %v2495_v36 = vpop.permute.xlu1 %2494 }
 0xaf6   : > { %3360 = vmatprep.subr.bf16.mxu0 %v3597_v48 }
 0xaf9   : > { %3357 = vmatmul.mubr.msk.bf16.vlgmr.msra.gmra.mxu1 %vm580_vm2, %v2393_v8 }
 0xafa   : > { %3367 = vmatpush3.bf16.xpose.msra.mxu1 %v2502_v34  ;;  %3368 = vmatprep.mubr.msk.bf16.mxu1 %vm3598_vm1, %v3597_v48 }
 0xafb   : > { %3378 = vmatprep.subr.bf16.mxu1 %v3597_v48 }
 0xb01   : > { %3369 = vmatmul.mubr.msk.bf16.vlgmr.msra.gmra.mxu1 %vm580_vm2, %v2495_v36 }
 0xb02   : > { %3380 = vmatprep.mubr.msk.bf16.mxu1 %vm3598_vm1, %v3597_v48 }
 0xb70   : > { %v2146_v37 = vpop.f32.mrf.mxu1  ;;  %v2099_v14 = vpop.f32.mrf.mxu0 }
 0xb72   : > { %v3324_v40 = vpop.f32.mrf.mxu1  ;;  %v3318_v41 = vpop.f32.mrf.mxu0 }
 0xb74   : > { %v2149_v28 = vpop.f32.mrf.mxu1  ;;  %v2102_v42 = vpop.f32.mrf.mxu0 }
 0xb75   : > { %v2248_v43 = vpack.c.bf16 %v2149_v28, %v2146_v37  ;;  %v2247_v21 = vpack.c.bf16 %v2102_v42, %v2099_v14 }
 0xb76   : > { %v3325_v45 = vpop.f32.mrf.mxu1  ;;  %v3319_v30 = vpop.f32.mrf.mxu0 }
 0xb77   : > { %3340 = vmatprep.mubr.msk.bf16.mxu0 %vm580_vm2, %v2247_v21 }
 0xb78   : > { %3341 = vmatmul.mubr.msk.bf16.vlgmr.msra.gmra.mxu0 %vm580_vm2, %v2248_v43 }
 0xb79   : > { %3361 = vmatpush3.bf16.xpose.msra.mxu0 %v2451_v47 }
 0xb7a   : > { %3372 = vmatprep.subr.bf16.mxu0 %v3597_v48 }
 0xba9   : > { %v2240_v51 = vpop.f32.mrf.mxu1 }
 0xbab   : > { %v3336_v29 = vpop.f32.mrf.mxu1 }
 0xbad   : > { %v2243_v35 = vpop.f32.mrf.mxu1 }
 0xbae   : > { %v2250_v24 = vpack.c.bf16 %v2243_v35, %v2240_v51 }
 0xbaf   : > { %v3337_v52 = vpop.f32.mrf.mxu1 }
 0xbb1   : > { %v2385_v23 = vpop.f32.mrf.mxu1 }
 0xbb2   : > { %v2548_v55 = vadd.f32 %v4208_v44, %v2385_v23 }
 0xbb3   : > { %v3352_v26 = vpop.f32.mrf.mxu1 }
 0xbb4   : > { %v2193_v39 = vpop.f32.mrf.mxu0  ;;  %v2556_v50 = vsel %vm788_vm3, %v2548_v55, -inf }
 0xbb5   : > { %2557 = vmax.xlane.f32.xlu0 %v2556_v50  ;;  %v2388_v58 = vpop.f32.mrf.mxu1 }
 0xbb6   : > { %v2549_v49 = vadd.f32 %v4214_v57, %v2388_v58  ;;  %v3330_v27 = vpop.f32.mrf.mxu0 }
 0xbb7   : > { %v3353_v59 = vpop.f32.mrf.mxu1 }
 0xbb8   : > { %v2196_v60 = vpop.f32.mrf.mxu0  ;;  %v2559_v61 = vsel %vm788_vm3, %v2549_v49, -inf }
 0xbb9   : > { %v2249_v62 = vpack.c.bf16 %v2196_v60, %v2193_v39  ;;  %2560 = vmax.xlane.f32.xlu1 %v2559_v61  ;;  %v2436_v63 = vpop.f32.mrf.mxu1 }
 0xbba   : > { %v2550_v38 = vadd.f32 %v4208_v44, %v2436_v63  ;;  %v3331_v0 = vpop.f32.mrf.mxu0 }
 0xbbb   : > { %3344 = vmatprep.mubr.msk.bf16.mxu0 %vm580_vm2, %v2249_v62  ;;  %v3358_v2 = vpop.f32.mrf.mxu1 }
 0xbbc   : > { %3345 = vmatmul.mubr.msk.bf16.gmra.mxu0 %vm580_vm2, %v2250_v24  ;;  %v2562_v32 = vsel %vm788_vm3, %v2550_v38, -inf }
 0xbbd   : > { %2563 = vmax.xlane.f32.xlu0 %v2562_v32  ;;  %v2439_v54 = vpop.f32.mrf.mxu1  ;;  %3362 = vmatprep.mubr.msk.bf16.mxu0 %vm3598_vm1, %v3597_v48 }
 0xbbe   : > { %v2551_v7 = vadd.f32 %v4214_v57, %v2439_v54 }
 0xbbf   : > { %v3359_v9 = vpop.f32.mrf.mxu1 }
 0xbc0   : > { %v2565_v12 = vsel %vm788_vm3, %v2551_v7, -inf }
 0xbc1   : > { %2566 = vmax.xlane.f32.xlu0 %v2565_v12  ;;  %v2538_v5 = vpop.f32.mrf.mxu1 }
 0xbc2   : > { %v2554_v50 = vadd.f32 %v4208_v44, %v2538_v5 }
 0xbc3   : > { %v3370_v6 = vpop.f32.mrf.mxu1 }
 0xbc4   : > { %3363 = vmatmul.mubr.msk.bf16.vlgmr.msra.gmra.mxu0 %vm580_vm2, %v2444_v16 }
 0xbc5   : > { %v2541_v18 = vpop.f32.mrf.mxu1  ;;  %3374 = vmatprep.mubr.msk.bf16.mxu0 %vm3598_vm1, %v3597_v48 }
 0xbc6   : > { %v2555_v27 = vadd.f32 %v4214_v57, %v2541_v18 }
 0xbc7   : > { %v3371_v22 = vpop.f32.mrf.mxu1 }
 0xbc8   : > { %v2577_v62 = vsel %vm788_vm3, %v2555_v27, -inf }
 0xc38   : > { %v3342_v25 = vpop.f32.mrf.mxu0 }
 0xc39   : > { %v4231_v31 = vadd.f32 %v3342_v25, %v4075_v3 }
 0xc3a   : > { %v2302_v33 = vpop.f32.mrf.mxu0 }
 0xc3b   : > { %v4234_v20 = vadd.f32 %v2302_v33, %v4078_v10 }
 0xc3c   : > { %v3343_v8 = vpop.f32.mrf.mxu0 }
 0xc3d   : > { %v4237_v34 = vadd.f32 %v3343_v8, %v4081_v15 }
 0xc3e   : > { %v2305_v36 = vpop.f32.mrf.mxu0  ;;  %v2558_v14 = vpop.xlane.xlu0 %2557 }
 0xc3f   : > { %v4240_v37 = vadd.f32 %v2305_v36, %v4083_v17  ;;  %v2580_v41 = vsub.f32 %v2548_v55, %v2558_v14 }
 0xc41   : > { %v2588_v43 = vmul.f32 1.442695, %v2580_v41 }
 0xc42   : > { %v2561_v28 = vpop.xlane.xlu1 %2560 }
 0xc43   : > { %v2581_v42 = vsub.f32 %v2549_v49, %v2561_v28  ;;  %3549 = vpow2.f32 %v2588_v43 }
 0xc45   : > { %v2590_v30 = vmul.f32 1.442695, %v2581_v42 }
 0xc46   : > { %v2564_v40 = vpop.xlane.xlu0 %2563 }
 0xc47   : > { %v2582_v3 = vsub.f32 %v2550_v38, %v2564_v40  ;;  %3551 = vpow2.f32 %v2590_v30 }
 0xc49   : > { %v2592_v15 = vmul.f32 1.442695, %v2582_v3 }
 0xc4a   : > { %v2567_v21 = vpop.xlane.xlu0 %2566 }
 0xc4b   : > { %v2583_v51 = vsub.f32 %v2551_v7, %v2567_v21  ;;  %3553 = vpow2.f32 %v2592_v15 }
 0xc4d   : > { %v2594_v23 = vmul.f32 1.442695, %v2583_v51 }
 0xc4f   : > { %3555 = vpow2.f32 %v2594_v23 }
 0xc50   : > { %v4261_v60 = vpop.eup %3549 }
 0xc54   : > { %v3552_v61 = vpop.eup %3551 }
 0xc58   : > { %v3554_v63 = vpop.eup %3553 }
 0xc59   : > { %v2610_v24 = vsel %vm788_vm3, %v3554_v63, 0.0 }
 0xc5c   : > { %v3556_v38 = vpop.eup %3555 }
 0xc5d   : > { %v2613_v0 = vsel %vm788_vm3, %v3556_v38, 0.0 }
 0xc7c   : > { %v3346_v45 = vpop.f32.mrf.mxu0 }
 0xc7d   : > { %v4243_v10 = vadd.f32 %v3346_v45, %v4094_v46 }
 0xc7e   : > { %v2318_v47 = vpop.f32.mrf.mxu0 }
 0xc7f   : > { %v4246_v17 = vadd.f32 %v2318_v47, %v4098_v19 }
 0xc80   : > { %v3347_v29 = vpop.f32.mrf.mxu0 }
 0xc81   : > { %v4249_v35 = vadd.f32 %v3347_v29, %v4101_v53 }
 0xc82   : > { %v2321_v52 = vpop.f32.mrf.mxu0 }
 0xc83   : > { %v4252_v55 = vadd.f32 %v2321_v52, %v4103_v56  ;;  %v2574_v56 = vsel %vm788_vm3, %v2554_v50, -inf }
 0xc84   : > { %v2487_v46 = vpop.f32.mrf.mxu0 }
 0xc85   : > { %v2552_v26 = vadd.f32 %v4208_v44, %v2487_v46  ;;  %v2604_v44 = vsel %vm788_vm3, %v4261_v60, 0.0 }
 0xc86   : > { %v3364_v39 = vpop.f32.mrf.mxu0 }
 0xc87   : > { %v2568_v19 = vsel %vm788_vm3, %v2552_v26, -inf }
 0xc88   : > { %v2490_v58 = vpop.f32.mrf.mxu0  ;;  %2569 = vmax.xlane.f32.xlu0 %v2568_v19 }
 0xc89   : > { %v2553_v53 = vadd.f32 %v4214_v57, %v2490_v58  ;;  %v2607_v57 = vsel %vm788_vm3, %v3552_v61, 0.0 }
 0xc8a   : > { %v3365_v49 = vpop.f32.mrf.mxu0 }
 0xc8b   : > { %v2571_v59 = vsel %vm788_vm3, %v2553_v53, -inf }
 0xc8c   : > { %2572 = vmax.xlane.f32.xlu1 %v2571_v59  ;;  %2575 = vmax.xlane.f32.xlu0 %v2574_v56 }
 0xc90   : > { %2605 = vadd.xlane.f32.xlu0 %v2604_v44  ;;  %2578 = vmax.xlane.f32.xlu1 %v2577_v62 }
 0xc94   : > { %2611 = vadd.xlane.f32.xlu0 %v2610_v24  ;;  %2608 = vadd.xlane.f32.xlu1 %v2607_v57  ;;  %v3065_v24 = vld [vmem:[%s4330_s5 + $0xc] sm:$0xf] }
 0xc95   : > { %v2855_v57 = vsel %vm1086_vm4, %v3065_v24, 0 }
 0xc98   : > { %2614 = vadd.xlane.f32.xlu1 %v2613_v0 }
 0xd11   : > { %v2570_v2 = vpop.xlane.xlu0 %2569 }
 0xd12   : > { %v2584_v32 = vsub.f32 %v2552_v26, %v2570_v2 }
 0xd14   : > { %v2596_v5 = vmul.f32 1.442695, %v2584_v32 }
 0xd15   : > { %v2573_v54 = vpop.xlane.xlu1 %2572  ;;  %v2576_v7 = vpop.xlane.xlu0 %2575 }
 0xd16   : > { %v2586_v9 = vsub.f32 %v2554_v50, %v2576_v7  ;;  %v2585_v40 = vsub.f32 %v2553_v53, %v2573_v54 }
 0xd18   : > { %v2600_v12 = vmul.f32 1.442695, %v2586_v9  ;;  %v2598_v41 = vmul.f32 1.442695, %v2585_v40 }
 0xd19   : > { %v2579_v16 = vpop.xlane.xlu1 %2578  ;;  %v2606_v3 = vpop.xlane.xlu0 %2605 }
 0xd1a   : > { %v2587_v6 = vsub.f32 %v2555_v27, %v2579_v16  ;;  %3557 = vpow2.f32 %v2600_v12 }
 0xd1b   : > { %3559 = vpow2.f32 %v2596_v5 }
 0xd1c   : > { %v2602_v18 = vmul.f32 1.442695, %v2587_v6 }
 0xd1d   : > { %v2609_v43 = vpop.xlane.xlu1 %2608  ;;  %v2612_v45 = vpop.xlane.xlu0 %2611 }
 0xd1e   : > { %3561 = vpow2.f32 %v2602_v18 }
 0xd1f   : > { %3563 = vpow2.f32 %v2598_v41 }
 0xd21   : > { %v2615_v21 = vpop.xlane.xlu1 %2614 }
 0xd22   : > { %3565 = vrcp.f32 %v2615_v21 }
 0xd23   : > { %3567 = vrcp.f32 %v2609_v43 }
 0xd24   : > { %3569 = vrcp.f32 %v2612_v45 }
 0xd25   : > { %3571 = vrcp.f32 %v2606_v3 }
 0xd27   : > { %v3558_v22 = vpop.eup %3557 }
 0xd28   : > { %v2622_v25 = vsel %vm788_vm3, %v3558_v22, 0.0  ;;  %v4270_v33 = vpop.eup %3559 }
 0xd29   : > { %2623 = vadd.xlane.f32.xlu0 %v2622_v25  ;;  %v2616_v14 = vsel %vm788_vm3, %v4270_v33, 0.0 }
 0xd2b   : > { %v3562_v8 = vpop.eup %3561 }
 0xd2c   : > { %v2625_v36 = vsel %vm788_vm3, %v3562_v8, 0.0  ;;  %v3564_v28 = vpop.eup %3563 }
 0xd2d   : > { %2626 = vadd.xlane.f32.xlu1 %v2625_v36  ;;  %2617 = vadd.xlane.f32.xlu0 %v2616_v14  ;;  %v2619_v42 = vsel %vm788_vm3, %v3564_v28, 0.0 }
 0xd3e   : > { %2695 = vrot.lane.b32.xlu1 %v3762_v1, %s3609_s19 }
 0xd42   : > { %2742 = vrot.lane.b32.xlu1 %v3768_v11, %s3609_s19  ;;  %v3566_v11 = vpop.eup %3565 }
 0xd43   : > { %2648 = vrot.lane.b32.xlu0 %v3764_v4, %s3609_s19  ;;  %v3568_v4 = vpop.eup %3567  ;;  %v2639_v29 = vmul.f32 %v3566_v11, %v3556_v38 }
 0xd44   : > { %v3570_v47 = vpop.eup %3569  ;;  %v2637_v52 = vmul.f32 %v3568_v4, %v3552_v61 }
 0xd45   : > { %v3572_v51 = vpop.eup %3571  ;;  %v2638_v46 = vmul.f32 %v3570_v47, %v3554_v63 }
 0xd46   : > { %v2636_v26 = vmul.f32 %v3572_v51, %v4261_v60 }
 0xd47   : > { %v2645_v39 = vpack.c.bf16 %v2639_v29, %v2638_v46 }
 0xd48   : > { %v2644_v50 = vpack.c.bf16 %v2637_v52, %v2636_v26 }
 0xd66   : > { %2620 = vadd.xlane.f32.xlu1 %v2619_v42 }
 0xd77   : > { %2789 = vrot.lane.b32.xlu1 %v3771_v13, %s3609_s19 }
 0xdb2   : > { %v2624_v1 = vpop.xlane.xlu0 %2623 }
 0xdb6   : > { %v2627_v30 = vpop.xlane.xlu1 %2626  ;;  %v2618_v15 = vpop.xlane.xlu0 %2617 }
 0xdb7   : > { %3573 = vrcp.f32 %v2627_v30 }
 0xdb8   : > { %3575 = vrcp.f32 %v2624_v1 }
 0xdb9   : > { %3577 = vrcp.f32 %v2618_v15 }
 0xdba   : > { %v2696_v23 = vpop.permute.xlu1 %2695  ;;  %v2649_v13 = vpop.permute.xlu0 %2648 }
 0xdbb   : > { %3379 = vmatpush3.bf16.msra.mxu1 %v2696_v23  ;;  %3373 = vmatpush3.bf16.msra.mxu0 %v2649_v13 }
 0xdbc   : > { %3390 = vmatprep.subr.bf16.mxu1 %v3597_v48  ;;  %3384 = vmatprep.subr.bf16.mxu0 %v3597_v48 }
 0xdbe   : > { %3381 = vmatmul.mubr.msk.bf16.vlgmr.msra.gmra.mxu1 %vm788_vm3, %v2645_v39  ;;  %v2743_v19 = vpop.permute.xlu1 %2742  ;;  %3375 = vmatmul.mubr.msk.bf16.vlgmr.msra.gmra.mxu0 %vm788_vm3, %v2644_v50 }
 0xdbf   : > { %3392 = vmatprep.mubr.msk.bf16.mxu1 %vm3598_vm1, %v3597_v48  ;;  %3385 = vmatpush3.bf16.msra.mxu0 %v2743_v19 }
 0xdc0   : > { %3386 = vmatprep.mubr.msk.bf16.mxu0 %vm3598_vm1, %v3597_v48  ;;  %3413 = vmatprep.subr.msk.bf16.mxu0 %vm1086_vm4, %v3065_v24 }
 0xdc4   : > { %v3574_v58 = vpop.eup %3573 }
 0xdc5   : > { %v3576_v49 = vpop.eup %3575  ;;  %v2643_v27 = vmul.f32 %v3574_v58, %v3562_v8 }
 0xdc6   : > { %v2642_v56 = vmul.f32 %v3576_v49, %v3558_v22  ;;  %v3578_v61 = vpop.eup %3577 }
 0xdc7   : > { %v2640_v62 = vmul.f32 %v3578_v61, %v4270_v33 }
 0xdc8   : > { %v2647_v60 = vpack.c.bf16 %v2643_v27, %v2642_v56 }
 0xdef   : > { %v2621_v53 = vpop.xlane.xlu1 %2620 }
 0xdf0   : > { %3579 = vrcp.f32 %v2621_v53 }
 0xdf3   : > { %v2790_v59 = vpop.permute.xlu1 %2789 }
 0xdf4   : > { %3391 = vmatpush3.bf16.msra.mxu1 %v2790_v59 }
 0xdf7   : > { %3393 = vmatmul.mubr.msk.bf16.vlgmr.msra.gmra.mxu1 %vm788_vm3, %v2647_v60 }
 0xdfd   : > { %v3580_v44 = vpop.eup %3579 }
 0xdfe   : > { %v2641_v63 = vmul.f32 %v3580_v44, %v3564_v28 }
 0xe00   : > { %v2646_v48 = vpack.c.bf16 %v2641_v63, %v2640_v62 }
 0xe02   : > { %3387 = vmatmul.mubr.msk.bf16.vlgmr.msra.gmra.mxu0 %vm788_vm3, %v2646_v48 }
 0xe03   : > { %3397 = vmatpush3.bf16.msra.mxu0 %v2855_v57 }
 0xe7e   : > { %v2735_v38 = vpop.f32.mrf.mxu1  ;;  %v2688_v0 = vpop.f32.mrf.mxu0 }
 0xe80   : > { %v3382_v2 = vpop.f32.mrf.mxu1  ;;  %v3376_v32 = vpop.f32.mrf.mxu0 }
 0xe82   : > { %v2738_v54 = vpop.f32.mrf.mxu1  ;;  %v2691_v7 = vpop.f32.mrf.mxu0 }
 0xe83   : > { %v2837_v9 = vpack.c.bf16 %v2738_v54, %v2735_v38  ;;  %v2836_v12 = vpack.c.bf16 %v2691_v7, %v2688_v0 }
 0xe84   : > { %v3383_v5 = vpop.f32.mrf.mxu1  ;;  %v3377_v16 = vpop.f32.mrf.mxu0 }
 0xe85   : > { %3398 = vmatprep.mubr.msk.bf16.mxu0 %vm580_vm2, %v2836_v12 }
 0xe86   : > { %3399 = vmatmul.mubr.msk.bf16.vlgmr.msra.gmra.mxu0 %vm580_vm2, %v2837_v9 }
 0xeb7   : > { %v2829_v6 = vpop.f32.mrf.mxu1 }
 0xeb9   : > { %v3394_v18 = vpop.f32.mrf.mxu1 }
 0xebb   : > { %v2832_v22 = vpop.f32.mrf.mxu1 }
 0xebc   : > { %v2839_v40 = vpack.c.bf16 %v2832_v22, %v2829_v6 }
 0xebd   : > { %v3395_v25 = vpop.f32.mrf.mxu1 }
 0xec2   : > { %v2782_v33 = vpop.f32.mrf.mxu0 }
 0xec4   : > { %v3388_v8 = vpop.f32.mrf.mxu0 }
 0xec6   : > { %v2785_v36 = vpop.f32.mrf.mxu0 }
 0xec7   : > { %v2838_v14 = vpack.c.bf16 %v2785_v36, %v2782_v33 }
 0xec8   : > { %v3389_v41 = vpop.f32.mrf.mxu0 }
 0xec9   : > { %3402 = vmatprep.mubr.msk.bf16.mxu0 %vm580_vm2, %v2838_v14 }
 0xeca   : > { %3403 = vmatmul.mubr.msk.bf16.gmra.mxu0 %vm580_vm2, %v2839_v40 }
 0xf46   : > { %v3400_v28 = vpop.f32.mrf.mxu0 }
 0xf47   : > { %v2924_v42 = vadd.f32 %v3400_v28, %v4231_v31 }
 0xf48   : > { %v2891_v43 = vpop.f32.mrf.mxu0 }
 0xf49   : > { %2932 = vst.msk [vmem:[%s307_s24 + $0x10] sm:$0xff] %vm318_vm0, %v2924_v42  ;;  %v2922_v3 = vadd.f32 %v2891_v43, %v4234_v20 }
 0xf4a   : > { %v3401_v21 = vpop.f32.mrf.mxu0 }
 0xf4b   : > { %2930 = vst.msk [vmem:[%s307_s24] sm:$0xff] %vm318_vm0, %v2922_v3  ;;  %v2925_v45 = vadd.f32 %v3401_v21, %v4237_v34 }
 0xf4c   : > { %v2894_v1 = vpop.f32.mrf.mxu0 }
 0xf4d   : > { %2933 = vst.msk [vmem:[%s307_s24 + $0x18] sm:$0xff] %vm318_vm0, %v2925_v45  ;;  %v2923_v11 = vadd.f32 %v2894_v1, %v4240_v37 }
 0xf4f   : > { %2931 = vst.msk [vmem:[%s307_s24 + $0x8] sm:$0xff] %vm318_vm0, %v2923_v11 }
 0xf8a   : > { %v3404_v4 = vpop.f32.mrf.mxu0 }
 0xf8b   : > { %v2928_v31 = vadd.f32 %v3404_v4, %v4243_v10 }
 0xf8c   : > { %v2907_v30 = vpop.f32.mrf.mxu0 }
 0xf8d   : > { %2936 = vst.msk [vmem:[%s307_s24 + $0x30] sm:$0xff] %vm318_vm0, %v2928_v31  ;;  %v2926_v20 = vadd.f32 %v2907_v30, %v4246_v17 }
 0xf8e   : > { %v3405_v47 = vpop.f32.mrf.mxu0 }
 0xf8f   : > { %2934 = vst.msk [vmem:[%s307_s24 + $0x20] sm:$0xff] %vm318_vm0, %v2926_v20  ;;  %v2929_v34 = vadd.f32 %v3405_v47, %v4249_v35 }
 0xf90   : > { %v2910_v15 = vpop.f32.mrf.mxu0 }
 0xf91   : > { %2937 = vst.msk [vmem:[%s307_s24 + $0x38] sm:$0xff] %vm318_vm0, %v2929_v34  ;;  %v2927_v37 = vadd.f32 %v2910_v15, %v4252_v55 }
 0xf93   : > { %2935 = vst.msk [vmem:[%s307_s24 + $0x28] sm:$0xff] %vm318_vm0, %v2927_v37 }
 0xf94 PF: > { %s18_s27 = sadd.s32 1, %s3595_s27  }
 0xf95   : > { %p15_p4 = scmp.ge.s32.totalorder %s18_s27, 4  }
 0xf97   :  { %17 = sbr.rel (!%p15_p4) target bundleno = 1 (0x1), region = 88 }

</bundles_post_ra>
